<compile_context>
chip_gen: v7x
topology: tpu7x:2x2x1
jax: 0.10.0
libtpu: 0.0.40
codegen_flags: <defaults>
</compile_context>

<pallas_src>
import jax
import jax.numpy as jnp
import numpy as np
from jax.experimental import pallas as pl
from jax.experimental.pallas import tpu as pltpu

_EPS = 1e-5


def _bn_relu(h, gamma, beta):
    """BatchNorm (batch statistics over rows, biased var) + ReLU on (rows, C)."""
    mean = jnp.mean(h, axis=0, keepdims=True)
    d = h - mean
    var = jnp.mean(d * d, axis=0, keepdims=True)
    return jnp.maximum(d * jax.lax.rsqrt(var + _EPS) * gamma + beta, 0.0)


def eeg_kernel(x_even_ref, x_odd_ref,
               w1_ref, b1_ref, g1_ref, be1_ref,
               w2_ref, b2_ref, g2_ref, be2_ref,
               w3_ref, b3_ref, g3_ref, be3_ref,
               w4_ref, b4_ref, g4_ref, be4_ref,
               w5_ref, b5_ref, g5_ref, be5_ref,
               wl_ref, bl_ref,
               out_ref,
               h1pad_ref, h3pad_ref):
    B, Lh, Cin = x_even_ref.shape           # Lh == L1 + 7
    L1 = Lh - 7
    C1 = h1pad_ref.shape[-1]                # 32
    C2 = h3pad_ref.shape[-1]                # 64
    L2 = (L1 - 1) // 2 + 1
    R1 = B * L1
    R2 = B * L2

    # --- Conv1d(Cin, 32, k=15, s=2, p=7): 15 shifted bf16 matmuls, f32 accum (MXU) ---
    # output pos l uses padded pos 2l+k; k=2m -> x_even[l+m], k=2m+1 -> x_odd[l+m]
    xe = x_even_ref[...]                    # (B, L1+7, Cin) bf16
    xo = x_odd_ref[...]
    acc = jnp.zeros((R1, C1), jnp.float32)
    for k in range(15):
        m = k // 2
        src = xe if (k % 2 == 0) else xo
        lhs = src[:, m:m + L1, :].reshape(R1, Cin)
        acc = acc + jnp.dot(lhs, w1_ref[k], preferred_element_type=jnp.float32)
    h1 = _bn_relu(acc + b1_ref[...], g1_ref[...], be1_ref[...])      # (R1, 32) f32

    # --- Depthwise Conv1d(32, 32, k=3, s=1, p=1, groups=32) ---
    # write into padded scratch; zero only the two boundary rows.
    h1pad_ref[:, 0:1, :] = jnp.zeros((B, 1, C1), jnp.float32)
    h1pad_ref[:, L1 + 1:L1 + 2, :] = jnp.zeros((B, 1, C1), jnp.float32)
    h1pad_ref[:, 1:L1 + 1, :] = h1.reshape(B, L1, C1)
    w2 = w2_ref[...]                                                  # (3, 32)
    h2 = (h1pad_ref[:, 0:L1, :] * w2[0:1, :]
          + h1pad_ref[:, 1:L1 + 1, :] * w2[1:2, :]
          + h1pad_ref[:, 2:L1 + 2, :] * w2[2:3, :])
    h2 = _bn_relu(h2.reshape(R1, C1) + b2_ref[...], g2_ref[...], be2_ref[...])

    # --- Pointwise Conv1d(32, 64) (MXU, bf16 operands, f32 accum) ---
    h3 = _bn_relu(jnp.dot(h2.astype(jnp.bfloat16), w3_ref[...],
                          preferred_element_type=jnp.float32) + b3_ref[...],
                  g3_ref[...], be3_ref[...])                          # (R1, 64)

    # --- Depthwise Conv1d(64, 64, k=3, s=2, p=1, groups=64) ---
    # taps are read in-kernel via stride-2 slices of the padded scratch.
    h3pad_ref[:, 0:1, :] = jnp.zeros((B, 1, C2), jnp.float32)
    h3pad_ref[:, L1 + 1:L1 + 2, :] = jnp.zeros((B, 1, C2), jnp.float32)
    h3pad_ref[:, 1:L1 + 1, :] = h3.reshape(B, L1, C2)
    w4 = w4_ref[...]                                                  # (3, 64)
    h4 = (h3pad_ref[:, pl.ds(0, L2, stride=2), :] * w4[0:1, :]
          + h3pad_ref[:, pl.ds(1, L2, stride=2), :] * w4[1:2, :]
          + h3pad_ref[:, pl.ds(2, L2, stride=2), :] * w4[2:3, :])
    h4 = _bn_relu(h4.reshape(R2, C2) + b4_ref[...], g4_ref[...], be4_ref[...])

    # --- Pointwise Conv1d(64, 128) (MXU) ---
    h5 = _bn_relu(jnp.dot(h4.astype(jnp.bfloat16), w5_ref[...],
                          preferred_element_type=jnp.float32) + b5_ref[...],
                  g5_ref[...], be5_ref[...])                          # (R2, 128)

    # --- AdaptiveAvgPool1d(1) + Flatten + Linear(128, 1) (exact f32 on VPU/XLU) ---
    pooled = jnp.mean(h5.reshape(B, L2, h5.shape[-1]), axis=1)        # (B, 128)
    out_ref[...] = jnp.sum(pooled * wl_ref[...], axis=1, keepdims=True) + bl_ref[...]


def eeg_mobilenet_forward(x, p):
    """x: (B, T, in_channels) float32  ->  (B,) float32 (num_classes == 1)."""
    B, T, Cin = x.shape
    L1 = (T + 2 * 7 - 15) // 2 + 1
    L2 = (L1 + 2 * 1 - 3) // 2 + 1
    Lp = T + 14
    pad_hi = 7 + (Lp % 2)                    # make padded time length even
    Lh = (Lp + (Lp % 2)) // 2                # == L1 + 7

    # Layout glue only (1x data): zero-pad, split even/odd time phases, cast to
    # bf16 so the conv1 matmul operands arrive halved over HBM.
    xp = jnp.pad(x.astype(jnp.float32), ((0, 0), (7, pad_hi), (0, 0)))
    xr = xp.reshape(B, Lh, 2, Cin)
    x_even = xr[:, :, 0, :].astype(jnp.bfloat16)
    x_odd = xr[:, :, 1, :].astype(jnp.bfloat16)

    args = (x_even, x_odd,
            p['w1'], p['b1'], p['g1'], p['be1'],
            p['w2'], p['b2'], p['g2'], p['be2'],
            p['w3'], p['b3'], p['g3'], p['be3'],
            p['w4'], p['b4'], p['g4'], p['be4'],
            p['w5'], p['b5'], p['g5'], p['be5'],
            p['wl'], p['bl'])

    flops = int(2 * B * L1 * 15 * Cin * 32 + 2 * B * L1 * 3 * 32
                + 2 * B * L1 * 32 * 64 + 2 * B * L2 * 3 * 64
                + 2 * B * L2 * 64 * 128 + 2 * B * 128)
    bytes_accessed = int(sum(a.size * a.dtype.itemsize for a in args) + B * 4)
    cost = pl.CostEstimate(flops=flops, transcendentals=32 + 32 + 64 + 64 + 128,
                           bytes_accessed=bytes_accessed)

    vmem = pl.BlockSpec(memory_space=pltpu.MemorySpace.VMEM)
    y = pl.pallas_call(
        eeg_kernel,
        out_shape=jax.ShapeDtypeStruct((B, 1), jnp.float32),
        in_specs=[vmem] * len(args),
        out_specs=vmem,
        scratch_shapes=[pltpu.VMEM((B, L1 + 2, 32), jnp.float32),
                        pltpu.VMEM((B, L1 + 2, 64), jnp.float32)],
        compiler_params=pltpu.CompilerParams(vmem_limit_bytes=32 * 1024 * 1024),
        cost_estimate=cost,
    )(*args)
    return y[:, 0]                                                   # matches .squeeze(1)


def init_params(key, in_channels=64):
    ks = jax.random.split(key, 12)

    def w(k, shape, scale, dtype=jnp.float32):
        return (scale * jax.random.normal(k, shape, jnp.float32)).astype(dtype)

    p = {}
    # Conv1d(in, 32, k=15): torch weight (32, in, 15) -> stored (15, in, 32), bf16 for MXU
    p['w1'] = w(ks[0], (15, in_channels, 32), 0.05, jnp.bfloat16)
    p['b1'] = w(ks[1], (1, 32), 0.05)
    p['g1'], p['be1'] = jnp.ones((1, 32), jnp.float32), jnp.zeros((1, 32), jnp.float32)
    # Depthwise Conv1d(32, 32, k=3, groups=32): torch (32, 1, 3) -> (3, 32) f32 (VPU)
    p['w2'] = w(ks[2], (3, 32), 0.3)
    p['b2'] = w(ks[3], (1, 32), 0.05)
    p['g2'], p['be2'] = jnp.ones((1, 32), jnp.float32), jnp.zeros((1, 32), jnp.float32)
    # Pointwise Conv1d(32, 64): torch (64, 32, 1) -> (32, 64) bf16
    p['w3'] = w(ks[4], (32, 64), 0.1, jnp.bfloat16)
    p['b3'] = w(ks[5], (1, 64), 0.05)
    p['g3'], p['be3'] = jnp.ones((1, 64), jnp.float32), jnp.zeros((1, 64), jnp.float32)
    # Depthwise Conv1d(64, 64, k=3, groups=64): torch (64, 1, 3) -> (3, 64) f32
    p['w4'] = w(ks[6], (3, 64), 0.3)
    p['b4'] = w(ks[7], (1, 64), 0.05)
    p['g4'], p['be4'] = jnp.ones((1, 64), jnp.float32), jnp.zeros((1, 64), jnp.float32)
    # Pointwise Conv1d(64, 128): torch (128, 64, 1) -> (64, 128) bf16
    p['w5'] = w(ks[8], (64, 128), 0.1, jnp.bfloat16)
    p['b5'] = w(ks[9], (1, 128), 0.05)
    p['g5'], p['be5'] = jnp.ones((1, 128), jnp.float32), jnp.zeros((1, 128), jnp.float32)
    # Linear(128, 1): torch weight (1, 128) kept as (1, 128) f32 (VPU dot)
    p['wl'] = w(ks[10], (1, 128), 0.1)
    p['bl'] = w(ks[11], (1, 1), 0.05)
    return p


def reference_forward(x, p):
    """Pure-JAX reference with identical dtypes (bf16 MXU operands, f32 BN/accum)."""
    def bn_relu(h, g, b):
        m = h.mean(axis=0, keepdims=True)
        d = h - m
        v = (d * d).mean(axis=0, keepdims=True)
        return jnp.maximum(d * jax.lax.rsqrt(v + _EPS) * g + b, 0.0)

    B, T, Cin = x.shape
    L1 = (T + 14 - 15) // 2 + 1
    L2 = (L1 + 2 - 3) // 2 + 1
    xp = jnp.pad(x.astype(jnp.float32), ((0, 0), (7, 7), (0, 0)))
    idx = 2 * jnp.arange(L1)[:, None] + jnp.arange(15)[None, :]
    cols = xp[:, idx, :].reshape(B * L1, 15 * Cin).astype(jnp.bfloat16)
    w1 = p['w1'].reshape(15 * Cin, 32)
    h1 = bn_relu(jnp.dot(cols, w1, preferred_element_type=jnp.float32) + p['b1'],
                 p['g1'], p['be1']).reshape(B, L1, 32)
    h1p = jnp.pad(h1, ((0, 0), (1, 1), (0, 0)))
    h2 = (h1p[:, 0:L1] * p['w2'][0] + h1p[:, 1:L1 + 1] * p['w2'][1]
          + h1p[:, 2:L1 + 2] * p['w2'][2]).reshape(B * L1, 32) + p['b2']
    h2 = bn_relu(h2, p['g2'], p['be2'])
    h3 = bn_relu(jnp.dot(h2.astype(jnp.bfloat16), p['w3'],
                         preferred_element_type=jnp.float32) + p['b3'],
                 p['g3'], p['be3']).reshape(B, L1, 64)
    h3p = jnp.pad(h3, ((0, 0), (1, 1), (0, 0)))
    h4 = (h3p[:, 0:2 * L2:2] * p['w4'][0] + h3p[:, 1:1 + 2 * L2:2] * p['w4'][1]
          + h3p[:, 2:2 + 2 * L2:2] * p['w4'][2]).reshape(B * L2, 64) + p['b4']
    h4 = bn_relu(h4, p['g4'], p['be4'])
    h5 = bn_relu(jnp.dot(h4.astype(jnp.bfloat16), p['w5'],
                         preferred_element_type=jnp.float32) + p['b5'],
                 p['g5'], p['be5'])
    pooled = h5.reshape(B, L2, 128).mean(axis=1)
    return (jnp.sum(pooled * p['wl'], axis=1, keepdims=True) + p['bl'])[:, 0]


if __name__ == "__main__":
    key = jax.random.PRNGKey(0)
    k_x, k_p = jax.random.split(key)

    B, T, Cin = 2, 16, 64          # module default in_channels=64, small batch/seq
    x = jax.random.normal(k_x, (B, T, Cin), jnp.float32)
    params = init_params(k_p, in_channels=Cin)

    y = jax.jit(eeg_mobilenet_forward)(x, params)
    y = jax.block_until_ready(y)

    y_ref = reference_forward(x, params)
    assert y.shape == (B,)
    np.testing.assert_allclose(np.asarray(y), np.asarray(y_ref),
                               rtol=2e-3, atol=2e-3)
    print("KERNEL_OK")
</pallas_src>

<mosaic_0001>
module attributes {stable_mosaic.version = 11 : i64} {
  func.func @eeg_kernel(%arg0: memref<2x15x64xbf16, #tpu.memory_space<vmem>>, %arg1: memref<2x15x64xbf16, #tpu.memory_space<vmem>>, %arg2: memref<15x64x32xbf16, #tpu.memory_space<vmem>>, %arg3: memref<1x32xf32, #tpu.memory_space<vmem>>, %arg4: memref<1x32xf32, #tpu.memory_space<vmem>>, %arg5: memref<1x32xf32, #tpu.memory_space<vmem>>, %arg6: memref<3x32xf32, #tpu.memory_space<vmem>>, %arg7: memref<1x32xf32, #tpu.memory_space<vmem>>, %arg8: memref<1x32xf32, #tpu.memory_space<vmem>>, %arg9: memref<1x32xf32, #tpu.memory_space<vmem>>, %arg10: memref<32x64xbf16, #tpu.memory_space<vmem>>, %arg11: memref<1x64xf32, #tpu.memory_space<vmem>>, %arg12: memref<1x64xf32, #tpu.memory_space<vmem>>, %arg13: memref<1x64xf32, #tpu.memory_space<vmem>>, %arg14: memref<3x64xf32, #tpu.memory_space<vmem>>, %arg15: memref<1x64xf32, #tpu.memory_space<vmem>>, %arg16: memref<1x64xf32, #tpu.memory_space<vmem>>, %arg17: memref<1x64xf32, #tpu.memory_space<vmem>>, %arg18: memref<64x128xbf16, #tpu.memory_space<vmem>>, %arg19: memref<1x128xf32, #tpu.memory_space<vmem>>, %arg20: memref<1x128xf32, #tpu.memory_space<vmem>>, %arg21: memref<1x128xf32, #tpu.memory_space<vmem>>, %arg22: memref<1x128xf32, #tpu.memory_space<vmem>>, %arg23: memref<1x1xf32, #tpu.memory_space<vmem>>, %arg24: memref<2x1xf32, #tpu.memory_space<vmem>>, %arg25: memref<2x10x32xf32, #tpu.memory_space<vmem>>, %arg26: memref<2x10x64xf32, #tpu.memory_space<vmem>>) attributes {dimension_semantics = [], scalar_prefetch = 0 : i64, scratch_operands = 2 : i64, tpu.core_type = #tpu.core_type<tc>} {
    %c0 = arith.constant 0 : index
    %c0_0 = arith.constant 0 : index
    %c0_1 = arith.constant 0 : index
    %0 = vector.load %arg0[%c0, %c0_0, %c0_1] : memref<2x15x64xbf16, #tpu.memory_space<vmem>>, vector<2x15x64xbf16>
    %c0_2 = arith.constant 0 : index
    %c0_3 = arith.constant 0 : index
    %c0_4 = arith.constant 0 : index
    %1 = vector.load %arg1[%c0_2, %c0_3, %c0_4] : memref<2x15x64xbf16, #tpu.memory_space<vmem>>, vector<2x15x64xbf16>
    %cst = arith.constant 0.000000e+00 : f32
    %2 = vector.broadcast %cst : f32 to vector<16x32xf32>
    %3 = vector.extract_strided_slice %0 {offsets = [0, 0, 0], sizes = [2, 8, 64], strides = [1, 1, 1]} : vector<2x15x64xbf16> to vector<2x8x64xbf16>
    %4 = vector.shape_cast %3 : vector<2x8x64xbf16> to vector<16x64xbf16>
    %c0_5 = arith.constant 0 : index
    %c0_6 = arith.constant 0 : index
    %c0_7 = arith.constant 0 : index
    %5 = vector.load %arg2[%c0_5, %c0_6, %c0_7] : memref<15x64x32xbf16, #tpu.memory_space<vmem>>, vector<1x64x32xbf16>
    %6 = vector.shape_cast %5 : vector<1x64x32xbf16> to vector<64x32xbf16>
    %cst_8 = arith.constant dense<0.000000e+00> : vector<16x32xf32>
    %7 = tpu.matmul %4, %6, %cst_8 {dimension_numbers = #tpu.dot_dimension_numbers<[1], [0], [0], [1], [0, 0, 1, 1], [], []>} : vector<16x64xbf16>, vector<64x32xbf16>, vector<16x32xf32> -> vector<16x32xf32>
    %8 = arith.addf %2, %7 : vector<16x32xf32>
    %9 = vector.extract_strided_slice %1 {offsets = [0, 0, 0], sizes = [2, 8, 64], strides = [1, 1, 1]} : vector<2x15x64xbf16> to vector<2x8x64xbf16>
    %10 = vector.shape_cast %9 : vector<2x8x64xbf16> to vector<16x64xbf16>
    %c1 = arith.constant 1 : index
    %c0_9 = arith.constant 0 : index
    %c0_10 = arith.constant 0 : index
    %11 = vector.load %arg2[%c1, %c0_9, %c0_10] : memref<15x64x32xbf16, #tpu.memory_space<vmem>>, vector<1x64x32xbf16>
    %12 = vector.shape_cast %11 : vector<1x64x32xbf16> to vector<64x32xbf16>
    %cst_11 = arith.constant dense<0.000000e+00> : vector<16x32xf32>
    %13 = tpu.matmul %10, %12, %cst_11 {dimension_numbers = #tpu.dot_dimension_numbers<[1], [0], [0], [1], [0, 0, 1, 1], [], []>} : vector<16x64xbf16>, vector<64x32xbf16>, vector<16x32xf32> -> vector<16x32xf32>
    %14 = arith.addf %8, %13 : vector<16x32xf32>
    %15 = vector.extract_strided_slice %0 {offsets = [0, 1, 0], sizes = [2, 8, 64], strides = [1, 1, 1]} : vector<2x15x64xbf16> to vector<2x8x64xbf16>
    %16 = vector.shape_cast %15 : vector<2x8x64xbf16> to vector<16x64xbf16>
    %c2 = arith.constant 2 : index
    %c0_12 = arith.constant 0 : index
    %c0_13 = arith.constant 0 : index
    %17 = vector.load %arg2[%c2, %c0_12, %c0_13] : memref<15x64x32xbf16, #tpu.memory_space<vmem>>, vector<1x64x32xbf16>
    %18 = vector.shape_cast %17 : vector<1x64x32xbf16> to vector<64x32xbf16>
    %cst_14 = arith.constant dense<0.000000e+00> : vector<16x32xf32>
    %19 = tpu.matmul %16, %18, %cst_14 {dimension_numbers = #tpu.dot_dimension_numbers<[1], [0], [0], [1], [0, 0, 1, 1], [], []>} : vector<16x64xbf16>, vector<64x32xbf16>, vector<16x32xf32> -> vector<16x32xf32>
    %20 = arith.addf %14, %19 : vector<16x32xf32>
    %21 = vector.extract_strided_slice %1 {offsets = [0, 1, 0], sizes = [2, 8, 64], strides = [1, 1, 1]} : vector<2x15x64xbf16> to vector<2x8x64xbf16>
    %22 = vector.shape_cast %21 : vector<2x8x64xbf16> to vector<16x64xbf16>
    %c3 = arith.constant 3 : index
    %c0_15 = arith.constant 0 : index
    %c0_16 = arith.constant 0 : index
    %23 = vector.load %arg2[%c3, %c0_15, %c0_16] : memref<15x64x32xbf16, #tpu.memory_space<vmem>>, vector<1x64x32xbf16>
    %24 = vector.shape_cast %23 : vector<1x64x32xbf16> to vector<64x32xbf16>
    %cst_17 = arith.constant dense<0.000000e+00> : vector<16x32xf32>
    %25 = tpu.matmul %22, %24, %cst_17 {dimension_numbers = #tpu.dot_dimension_numbers<[1], [0], [0], [1], [0, 0, 1, 1], [], []>} : vector<16x64xbf16>, vector<64x32xbf16>, vector<16x32xf32> -> vector<16x32xf32>
    %26 = arith.addf %20, %25 : vector<16x32xf32>
    %27 = vector.extract_strided_slice %0 {offsets = [0, 2, 0], sizes = [2, 8, 64], strides = [1, 1, 1]} : vector<2x15x64xbf16> to vector<2x8x64xbf16>
    %28 = vector.shape_cast %27 : vector<2x8x64xbf16> to vector<16x64xbf16>
    %c4 = arith.constant 4 : index
    %c0_18 = arith.constant 0 : index
    %c0_19 = arith.constant 0 : index
    %29 = vector.load %arg2[%c4, %c0_18, %c0_19] : memref<15x64x32xbf16, #tpu.memory_space<vmem>>, vector<1x64x32xbf16>
    %30 = vector.shape_cast %29 : vector<1x64x32xbf16> to vector<64x32xbf16>
    %cst_20 = arith.constant dense<0.000000e+00> : vector<16x32xf32>
    %31 = tpu.matmul %28, %30, %cst_20 {dimension_numbers = #tpu.dot_dimension_numbers<[1], [0], [0], [1], [0, 0, 1, 1], [], []>} : vector<16x64xbf16>, vector<64x32xbf16>, vector<16x32xf32> -> vector<16x32xf32>
    %32 = arith.addf %26, %31 : vector<16x32xf32>
    %33 = vector.extract_strided_slice %1 {offsets = [0, 2, 0], sizes = [2, 8, 64], strides = [1, 1, 1]} : vector<2x15x64xbf16> to vector<2x8x64xbf16>
    %34 = vector.shape_cast %33 : vector<2x8x64xbf16> to vector<16x64xbf16>
    %c5 = arith.constant 5 : index
    %c0_21 = arith.constant 0 : index
    %c0_22 = arith.constant 0 : index
    %35 = vector.load %arg2[%c5, %c0_21, %c0_22] : memref<15x64x32xbf16, #tpu.memory_space<vmem>>, vector<1x64x32xbf16>
    %36 = vector.shape_cast %35 : vector<1x64x32xbf16> to vector<64x32xbf16>
    %cst_23 = arith.constant dense<0.000000e+00> : vector<16x32xf32>
    %37 = tpu.matmul %34, %36, %cst_23 {dimension_numbers = #tpu.dot_dimension_numbers<[1], [0], [0], [1], [0, 0, 1, 1], [], []>} : vector<16x64xbf16>, vector<64x32xbf16>, vector<16x32xf32> -> vector<16x32xf32>
    %38 = arith.addf %32, %37 : vector<16x32xf32>
    %39 = vector.extract_strided_slice %0 {offsets = [0, 3, 0], sizes = [2, 8, 64], strides = [1, 1, 1]} : vector<2x15x64xbf16> to vector<2x8x64xbf16>
    %40 = vector.shape_cast %39 : vector<2x8x64xbf16> to vector<16x64xbf16>
    %c6 = arith.constant 6 : index
    %c0_24 = arith.constant 0 : index
    %c0_25 = arith.constant 0 : index
    %41 = vector.load %arg2[%c6, %c0_24, %c0_25] : memref<15x64x32xbf16, #tpu.memory_space<vmem>>, vector<1x64x32xbf16>
    %42 = vector.shape_cast %41 : vector<1x64x32xbf16> to vector<64x32xbf16>
    %cst_26 = arith.constant dense<0.000000e+00> : vector<16x32xf32>
    %43 = tpu.matmul %40, %42, %cst_26 {dimension_numbers = #tpu.dot_dimension_numbers<[1], [0], [0], [1], [0, 0, 1, 1], [], []>} : vector<16x64xbf16>, vector<64x32xbf16>, vector<16x32xf32> -> vector<16x32xf32>
    %44 = arith.addf %38, %43 : vector<16x32xf32>
    %45 = vector.extract_strided_slice %1 {offsets = [0, 3, 0], sizes = [2, 8, 64], strides = [1, 1, 1]} : vector<2x15x64xbf16> to vector<2x8x64xbf16>
    %46 = vector.shape_cast %45 : vector<2x8x64xbf16> to vector<16x64xbf16>
    %c7 = arith.constant 7 : index
    %c0_27 = arith.constant 0 : index
    %c0_28 = arith.constant 0 : index
    %47 = vector.load %arg2[%c7, %c0_27, %c0_28] : memref<15x64x32xbf16, #tpu.memory_space<vmem>>, vector<1x64x32xbf16>
    %48 = vector.shape_cast %47 : vector<1x64x32xbf16> to vector<64x32xbf16>
    %cst_29 = arith.constant dense<0.000000e+00> : vector<16x32xf32>
    %49 = tpu.matmul %46, %48, %cst_29 {dimension_numbers = #tpu.dot_dimension_numbers<[1], [0], [0], [1], [0, 0, 1, 1], [], []>} : vector<16x64xbf16>, vector<64x32xbf16>, vector<16x32xf32> -> vector<16x32xf32>
    %50 = arith.addf %44, %49 : vector<16x32xf32>
    %51 = vector.extract_strided_slice %0 {offsets = [0, 4, 0], sizes = [2, 8, 64], strides = [1, 1, 1]} : vector<2x15x64xbf16> to vector<2x8x64xbf16>
    %52 = vector.shape_cast %51 : vector<2x8x64xbf16> to vector<16x64xbf16>
    %c8 = arith.constant 8 : index
    %c0_30 = arith.constant 0 : index
    %c0_31 = arith.constant 0 : index
    %53 = vector.load %arg2[%c8, %c0_30, %c0_31] : memref<15x64x32xbf16, #tpu.memory_space<vmem>>, vector<1x64x32xbf16>
    %54 = vector.shape_cast %53 : vector<1x64x32xbf16> to vector<64x32xbf16>
    %cst_32 = arith.constant dense<0.000000e+00> : vector<16x32xf32>
    %55 = tpu.matmul %52, %54, %cst_32 {dimension_numbers = #tpu.dot_dimension_numbers<[1], [0], [0], [1], [0, 0, 1, 1], [], []>} : vector<16x64xbf16>, vector<64x32xbf16>, vector<16x32xf32> -> vector<16x32xf32>
    %56 = arith.addf %50, %55 : vector<16x32xf32>
    %57 = vector.extract_strided_slice %1 {offsets = [0, 4, 0], sizes = [2, 8, 64], strides = [1, 1, 1]} : vector<2x15x64xbf16> to vector<2x8x64xbf16>
    %58 = vector.shape_cast %57 : vector<2x8x64xbf16> to vector<16x64xbf16>
    %c9 = arith.constant 9 : index
    %c0_33 = arith.constant 0 : index
    %c0_34 = arith.constant 0 : index
    %59 = vector.load %arg2[%c9, %c0_33, %c0_34] : memref<15x64x32xbf16, #tpu.memory_space<vmem>>, vector<1x64x32xbf16>
    %60 = vector.shape_cast %59 : vector<1x64x32xbf16> to vector<64x32xbf16>
    %cst_35 = arith.constant dense<0.000000e+00> : vector<16x32xf32>
    %61 = tpu.matmul %58, %60, %cst_35 {dimension_numbers = #tpu.dot_dimension_numbers<[1], [0], [0], [1], [0, 0, 1, 1], [], []>} : vector<16x64xbf16>, vector<64x32xbf16>, vector<16x32xf32> -> vector<16x32xf32>
    %62 = arith.addf %56, %61 : vector<16x32xf32>
    %63 = vector.extract_strided_slice %0 {offsets = [0, 5, 0], sizes = [2, 8, 64], strides = [1, 1, 1]} : vector<2x15x64xbf16> to vector<2x8x64xbf16>
    %64 = vector.shape_cast %63 : vector<2x8x64xbf16> to vector<16x64xbf16>
    %c10 = arith.constant 10 : index
    %c0_36 = arith.constant 0 : index
    %c0_37 = arith.constant 0 : index
    %65 = vector.load %arg2[%c10, %c0_36, %c0_37] : memref<15x64x32xbf16, #tpu.memory_space<vmem>>, vector<1x64x32xbf16>
    %66 = vector.shape_cast %65 : vector<1x64x32xbf16> to vector<64x32xbf16>
    %cst_38 = arith.constant dense<0.000000e+00> : vector<16x32xf32>
    %67 = tpu.matmul %64, %66, %cst_38 {dimension_numbers = #tpu.dot_dimension_numbers<[1], [0], [0], [1], [0, 0, 1, 1], [], []>} : vector<16x64xbf16>, vector<64x32xbf16>, vector<16x32xf32> -> vector<16x32xf32>
    %68 = arith.addf %62, %67 : vector<16x32xf32>
    %69 = vector.extract_strided_slice %1 {offsets = [0, 5, 0], sizes = [2, 8, 64], strides = [1, 1, 1]} : vector<2x15x64xbf16> to vector<2x8x64xbf16>
    %70 = vector.shape_cast %69 : vector<2x8x64xbf16> to vector<16x64xbf16>
    %c11 = arith.constant 11 : index
    %c0_39 = arith.constant 0 : index
    %c0_40 = arith.constant 0 : index
    %71 = vector.load %arg2[%c11, %c0_39, %c0_40] : memref<15x64x32xbf16, #tpu.memory_space<vmem>>, vector<1x64x32xbf16>
    %72 = vector.shape_cast %71 : vector<1x64x32xbf16> to vector<64x32xbf16>
    %cst_41 = arith.constant dense<0.000000e+00> : vector<16x32xf32>
    %73 = tpu.matmul %70, %72, %cst_41 {dimension_numbers = #tpu.dot_dimension_numbers<[1], [0], [0], [1], [0, 0, 1, 1], [], []>} : vector<16x64xbf16>, vector<64x32xbf16>, vector<16x32xf32> -> vector<16x32xf32>
    %74 = arith.addf %68, %73 : vector<16x32xf32>
    %75 = vector.extract_strided_slice %0 {offsets = [0, 6, 0], sizes = [2, 8, 64], strides = [1, 1, 1]} : vector<2x15x64xbf16> to vector<2x8x64xbf16>
    %76 = vector.shape_cast %75 : vector<2x8x64xbf16> to vector<16x64xbf16>
    %c12 = arith.constant 12 : index
    %c0_42 = arith.constant 0 : index
    %c0_43 = arith.constant 0 : index
    %77 = vector.load %arg2[%c12, %c0_42, %c0_43] : memref<15x64x32xbf16, #tpu.memory_space<vmem>>, vector<1x64x32xbf16>
    %78 = vector.shape_cast %77 : vector<1x64x32xbf16> to vector<64x32xbf16>
    %cst_44 = arith.constant dense<0.000000e+00> : vector<16x32xf32>
    %79 = tpu.matmul %76, %78, %cst_44 {dimension_numbers = #tpu.dot_dimension_numbers<[1], [0], [0], [1], [0, 0, 1, 1], [], []>} : vector<16x64xbf16>, vector<64x32xbf16>, vector<16x32xf32> -> vector<16x32xf32>
    %80 = arith.addf %74, %79 : vector<16x32xf32>
    %81 = vector.extract_strided_slice %1 {offsets = [0, 6, 0], sizes = [2, 8, 64], strides = [1, 1, 1]} : vector<2x15x64xbf16> to vector<2x8x64xbf16>
    %82 = vector.shape_cast %81 : vector<2x8x64xbf16> to vector<16x64xbf16>
    %c13 = arith.constant 13 : index
    %c0_45 = arith.constant 0 : index
    %c0_46 = arith.constant 0 : index
    %83 = vector.load %arg2[%c13, %c0_45, %c0_46] : memref<15x64x32xbf16, #tpu.memory_space<vmem>>, vector<1x64x32xbf16>
    %84 = vector.shape_cast %83 : vector<1x64x32xbf16> to vector<64x32xbf16>
    %cst_47 = arith.constant dense<0.000000e+00> : vector<16x32xf32>
    %85 = tpu.matmul %82, %84, %cst_47 {dimension_numbers = #tpu.dot_dimension_numbers<[1], [0], [0], [1], [0, 0, 1, 1], [], []>} : vector<16x64xbf16>, vector<64x32xbf16>, vector<16x32xf32> -> vector<16x32xf32>
    %86 = arith.addf %80, %85 : vector<16x32xf32>
    %87 = vector.extract_strided_slice %0 {offsets = [0, 7, 0], sizes = [2, 8, 64], strides = [1, 1, 1]} : vector<2x15x64xbf16> to vector<2x8x64xbf16>
    %88 = vector.shape_cast %87 : vector<2x8x64xbf16> to vector<16x64xbf16>
    %c14 = arith.constant 14 : index
    %c0_48 = arith.constant 0 : index
    %c0_49 = arith.constant 0 : index
    %89 = vector.load %arg2[%c14, %c0_48, %c0_49] : memref<15x64x32xbf16, #tpu.memory_space<vmem>>, vector<1x64x32xbf16>
    %90 = vector.shape_cast %89 : vector<1x64x32xbf16> to vector<64x32xbf16>
    %cst_50 = arith.constant dense<0.000000e+00> : vector<16x32xf32>
    %91 = tpu.matmul %88, %90, %cst_50 {dimension_numbers = #tpu.dot_dimension_numbers<[1], [0], [0], [1], [0, 0, 1, 1], [], []>} : vector<16x64xbf16>, vector<64x32xbf16>, vector<16x32xf32> -> vector<16x32xf32>
    %92 = arith.addf %86, %91 : vector<16x32xf32>
    %c0_51 = arith.constant 0 : index
    %c0_52 = arith.constant 0 : index
    %93 = vector.load %arg3[%c0_51, %c0_52] : memref<1x32xf32, #tpu.memory_space<vmem>>, vector<1x32xf32>
    %94 = vector.broadcast %93 : vector<1x32xf32> to vector<16x32xf32>
    %95 = arith.addf %92, %94 : vector<16x32xf32>
    %c0_53 = arith.constant 0 : index
    %c0_54 = arith.constant 0 : index
    %96 = vector.load %arg4[%c0_53, %c0_54] : memref<1x32xf32, #tpu.memory_space<vmem>>, vector<1x32xf32>
    %c0_55 = arith.constant 0 : index
    %c0_56 = arith.constant 0 : index
    %97 = vector.load %arg5[%c0_55, %c0_56] : memref<1x32xf32, #tpu.memory_space<vmem>>, vector<1x32xf32>
    %cst_57 = arith.constant dense<0.000000e+00> : vector<32xf32>
    %98 = vector.multi_reduction <add>, %95, %cst_57 [0] : vector<16x32xf32> to vector<32xf32>
    %99 = vector.shape_cast %98 : vector<32xf32> to vector<1x32xf32>
    %cst_58 = arith.constant 1.600000e+01 : f32
    %100 = vector.broadcast %cst_58 : f32 to vector<1x32xf32>
    %101 = arith.divf %99, %100 : vector<1x32xf32>
    %102 = vector.broadcast %101 : vector<1x32xf32> to vector<16x32xf32>
    %103 = arith.subf %95, %102 : vector<16x32xf32>
    %104 = arith.mulf %103, %103 : vector<16x32xf32>
    %cst_59 = arith.constant dense<0.000000e+00> : vector<32xf32>
    %105 = vector.multi_reduction <add>, %104, %cst_59 [0] : vector<16x32xf32> to vector<32xf32>
    %106 = vector.shape_cast %105 : vector<32xf32> to vector<1x32xf32>
    %cst_60 = arith.constant 1.600000e+01 : f32
    %107 = vector.broadcast %cst_60 : f32 to vector<1x32xf32>
    %108 = arith.divf %106, %107 : vector<1x32xf32>
    %cst_61 = arith.constant 9.99999974E-6 : f32
    %109 = vector.broadcast %cst_61 : f32 to vector<1x32xf32>
    %110 = arith.addf %108, %109 : vector<1x32xf32>
    %111 = math.rsqrt %110 : vector<1x32xf32>
    %112 = vector.broadcast %111 : vector<1x32xf32> to vector<16x32xf32>
    %113 = arith.mulf %103, %112 : vector<16x32xf32>
    %114 = vector.broadcast %96 : vector<1x32xf32> to vector<16x32xf32>
    %115 = arith.mulf %113, %114 : vector<16x32xf32>
    %116 = vector.broadcast %97 : vector<1x32xf32> to vector<16x32xf32>
    %117 = arith.addf %115, %116 : vector<16x32xf32>
    %cst_62 = arith.constant 0.000000e+00 : f32
    %118 = vector.broadcast %cst_62 : f32 to vector<16x32xf32>
    %119 = arith.maximumf %117, %118 : vector<16x32xf32>
    %cst_63 = arith.constant 0.000000e+00 : f32
    %120 = vector.broadcast %cst_63 : f32 to vector<2x1x32xf32>
    %c0_64 = arith.constant 0 : index
    %c0_65 = arith.constant 0 : index
    %c0_66 = arith.constant 0 : index
    %121 = vector.load %arg25[%c0_64, %c0_65, %c0_66] : memref<2x10x32xf32, #tpu.memory_space<vmem>>, vector<2x1x32xf32>
    tpu.vector_store %arg25[%c0_64, %c0_65, %c0_66], %120 {strides = array<i32>} : memref<2x10x32xf32, #tpu.memory_space<vmem>>, vector<2x1x32xf32>,
    %cst_67 = arith.constant 0.000000e+00 : f32
    %122 = vector.broadcast %cst_67 : f32 to vector<2x1x32xf32>
    %c0_68 = arith.constant 0 : index
    %c9_69 = arith.constant 9 : index
    %c0_70 = arith.constant 0 : index
    %123 = vector.load %arg25[%c0_68, %c9_69, %c0_70] : memref<2x10x32xf32, #tpu.memory_space<vmem>>, vector<2x1x32xf32>
    tpu.vector_store %arg25[%c0_68, %c9_69, %c0_70], %122 {strides = array<i32>} : memref<2x10x32xf32, #tpu.memory_space<vmem>>, vector<2x1x32xf32>,
    %124 = vector.shape_cast %119 : vector<16x32xf32> to vector<2x8x32xf32>
    %c0_71 = arith.constant 0 : index
    %c1_72 = arith.constant 1 : index
    %c0_73 = arith.constant 0 : index
    %125 = vector.load %arg25[%c0_71, %c1_72, %c0_73] : memref<2x10x32xf32, #tpu.memory_space<vmem>>, vector<2x8x32xf32>
    tpu.vector_store %arg25[%c0_71, %c1_72, %c0_73], %124 {strides = array<i32>} : memref<2x10x32xf32, #tpu.memory_space<vmem>>, vector<2x8x32xf32>,
    %c0_74 = arith.constant 0 : index
    %c0_75 = arith.constant 0 : index
    %126 = vector.load %arg6[%c0_74, %c0_75] : memref<3x32xf32, #tpu.memory_space<vmem>>, vector<3x32xf32>
    %c0_76 = arith.constant 0 : index
    %c0_77 = arith.constant 0 : index
    %c0_78 = arith.constant 0 : index
    %127 = vector.load %arg25[%c0_76, %c0_77, %c0_78] : memref<2x10x32xf32, #tpu.memory_space<vmem>>, vector<2x8x32xf32>
    %128 = vector.extract_strided_slice %126 {offsets = [0, 0], sizes = [1, 32], strides = [1, 1]} : vector<3x32xf32> to vector<1x32xf32>
    %129 = vector.shape_cast %128 : vector<1x32xf32> to vector<1x1x32xf32>
    %130 = vector.broadcast %129 : vector<1x1x32xf32> to vector<2x8x32xf32>
    %131 = arith.mulf %127, %130 : vector<2x8x32xf32>
    %c0_79 = arith.constant 0 : index
    %c1_80 = arith.constant 1 : index
    %c0_81 = arith.constant 0 : index
    %132 = vector.load %arg25[%c0_79, %c1_80, %c0_81] : memref<2x10x32xf32, #tpu.memory_space<vmem>>, vector<2x8x32xf32>
    %133 = vector.extract_strided_slice %126 {offsets = [1, 0], sizes = [1, 32], strides = [1, 1]} : vector<3x32xf32> to vector<1x32xf32>
    %134 = vector.shape_cast %133 : vector<1x32xf32> to vector<1x1x32xf32>
    %135 = vector.broadcast %134 : vector<1x1x32xf32> to vector<2x8x32xf32>
    %136 = arith.mulf %132, %135 : vector<2x8x32xf32>
    %137 = arith.addf %131, %136 : vector<2x8x32xf32>
    %c0_82 = arith.constant 0 : index
    %c2_83 = arith.constant 2 : index
    %c0_84 = arith.constant 0 : index
    %138 = vector.load %arg25[%c0_82, %c2_83, %c0_84] : memref<2x10x32xf32, #tpu.memory_space<vmem>>, vector<2x8x32xf32>
    %139 = vector.extract_strided_slice %126 {offsets = [2, 0], sizes = [1, 32], strides = [1, 1]} : vector<3x32xf32> to vector<1x32xf32>
    %140 = vector.shape_cast %139 : vector<1x32xf32> to vector<1x1x32xf32>
    %141 = vector.broadcast %140 : vector<1x1x32xf32> to vector<2x8x32xf32>
    %142 = arith.mulf %138, %141 : vector<2x8x32xf32>
    %143 = arith.addf %137, %142 : vector<2x8x32xf32>
    %144 = vector.shape_cast %143 : vector<2x8x32xf32> to vector<16x32xf32>
    %c0_85 = arith.constant 0 : index
    %c0_86 = arith.constant 0 : index
    %145 = vector.load %arg7[%c0_85, %c0_86] : memref<1x32xf32, #tpu.memory_space<vmem>>, vector<1x32xf32>
    %146 = vector.broadcast %145 : vector<1x32xf32> to vector<16x32xf32>
    %147 = arith.addf %144, %146 : vector<16x32xf32>
    %c0_87 = arith.constant 0 : index
    %c0_88 = arith.constant 0 : index
    %148 = vector.load %arg8[%c0_87, %c0_88] : memref<1x32xf32, #tpu.memory_space<vmem>>, vector<1x32xf32>
    %c0_89 = arith.constant 0 : index
    %c0_90 = arith.constant 0 : index
    %149 = vector.load %arg9[%c0_89, %c0_90] : memref<1x32xf32, #tpu.memory_space<vmem>>, vector<1x32xf32>
    %cst_91 = arith.constant dense<0.000000e+00> : vector<32xf32>
    %150 = vector.multi_reduction <add>, %147, %cst_91 [0] : vector<16x32xf32> to vector<32xf32>
    %151 = vector.shape_cast %150 : vector<32xf32> to vector<1x32xf32>
    %cst_92 = arith.constant 1.600000e+01 : f32
    %152 = vector.broadcast %cst_92 : f32 to vector<1x32xf32>
    %153 = arith.divf %151, %152 : vector<1x32xf32>
    %154 = vector.broadcast %153 : vector<1x32xf32> to vector<16x32xf32>
    %155 = arith.subf %147, %154 : vector<16x32xf32>
    %156 = arith.mulf %155, %155 : vector<16x32xf32>
    %cst_93 = arith.constant dense<0.000000e+00> : vector<32xf32>
    %157 = vector.multi_reduction <add>, %156, %cst_93 [0] : vector<16x32xf32> to vector<32xf32>
    %158 = vector.shape_cast %157 : vector<32xf32> to vector<1x32xf32>
    %cst_94 = arith.constant 1.600000e+01 : f32
    %159 = vector.broadcast %cst_94 : f32 to vector<1x32xf32>
    %160 = arith.divf %158, %159 : vector<1x32xf32>
    %cst_95 = arith.constant 9.99999974E-6 : f32
    %161 = vector.broadcast %cst_95 : f32 to vector<1x32xf32>
    %162 = arith.addf %160, %161 : vector<1x32xf32>
    %163 = math.rsqrt %162 : vector<1x32xf32>
    %164 = vector.broadcast %163 : vector<1x32xf32> to vector<16x32xf32>
    %165 = arith.mulf %155, %164 : vector<16x32xf32>
    %166 = vector.broadcast %148 : vector<1x32xf32> to vector<16x32xf32>
    %167 = arith.mulf %165, %166 : vector<16x32xf32>
    %168 = vector.broadcast %149 : vector<1x32xf32> to vector<16x32xf32>
    %169 = arith.addf %167, %168 : vector<16x32xf32>
    %cst_96 = arith.constant 0.000000e+00 : f32
    %170 = vector.broadcast %cst_96 : f32 to vector<16x32xf32>
    %171 = arith.maximumf %169, %170 : vector<16x32xf32>
    %172 = arith.truncf %171 : vector<16x32xf32> to vector<16x32xbf16>
    %c0_97 = arith.constant 0 : index
    %c0_98 = arith.constant 0 : index
    %173 = vector.load %arg10[%c0_97, %c0_98] : memref<32x64xbf16, #tpu.memory_space<vmem>>, vector<32x64xbf16>
    %cst_99 = arith.constant dense<0.000000e+00> : vector<16x64xf32>
    %174 = tpu.matmul %172, %173, %cst_99 {dimension_numbers = #tpu.dot_dimension_numbers<[1], [0], [0], [1], [0, 0, 1, 1], [], []>} : vector<16x32xbf16>, vector<32x64xbf16>, vector<16x64xf32> -> vector<16x64xf32>
    %c0_100 = arith.constant 0 : index
    %c0_101 = arith.constant 0 : index
    %175 = vector.load %arg11[%c0_100, %c0_101] : memref<1x64xf32, #tpu.memory_space<vmem>>, vector<1x64xf32>
    %176 = vector.broadcast %175 : vector<1x64xf32> to vector<16x64xf32>
    %177 = arith.addf %174, %176 : vector<16x64xf32>
    %c0_102 = arith.constant 0 : index
    %c0_103 = arith.constant 0 : index
    %178 = vector.load %arg12[%c0_102, %c0_103] : memref<1x64xf32, #tpu.memory_space<vmem>>, vector<1x64xf32>
    %c0_104 = arith.constant 0 : index
    %c0_105 = arith.constant 0 : index
    %179 = vector.load %arg13[%c0_104, %c0_105] : memref<1x64xf32, #tpu.memory_space<vmem>>, vector<1x64xf32>
    %cst_106 = arith.constant dense<0.000000e+00> : vector<64xf32>
    %180 = vector.multi_reduction <add>, %177, %cst_106 [0] : vector<16x64xf32> to vector<64xf32>
    %181 = vector.shape_cast %180 : vector<64xf32> to vector<1x64xf32>
    %cst_107 = arith.constant 1.600000e+01 : f32
    %182 = vector.broadcast %cst_107 : f32 to vector<1x64xf32>
    %183 = arith.divf %181, %182 : vector<1x64xf32>
    %184 = vector.broadcast %183 : vector<1x64xf32> to vector<16x64xf32>
    %185 = arith.subf %177, %184 : vector<16x64xf32>
    %186 = arith.mulf %185, %185 : vector<16x64xf32>
    %cst_108 = arith.constant dense<0.000000e+00> : vector<64xf32>
    %187 = vector.multi_reduction <add>, %186, %cst_108 [0] : vector<16x64xf32> to vector<64xf32>
    %188 = vector.shape_cast %187 : vector<64xf32> to vector<1x64xf32>
    %cst_109 = arith.constant 1.600000e+01 : f32
    %189 = vector.broadcast %cst_109 : f32 to vector<1x64xf32>
    %190 = arith.divf %188, %189 : vector<1x64xf32>
    %cst_110 = arith.constant 9.99999974E-6 : f32
    %191 = vector.broadcast %cst_110 : f32 to vector<1x64xf32>
    %192 = arith.addf %190, %191 : vector<1x64xf32>
    %193 = math.rsqrt %192 : vector<1x64xf32>
    %194 = vector.broadcast %193 : vector<1x64xf32> to vector<16x64xf32>
    %195 = arith.mulf %185, %194 : vector<16x64xf32>
    %196 = vector.broadcast %178 : vector<1x64xf32> to vector<16x64xf32>
    %197 = arith.mulf %195, %196 : vector<16x64xf32>
    %198 = vector.broadcast %179 : vector<1x64xf32> to vector<16x64xf32>
    %199 = arith.addf %197, %198 : vector<16x64xf32>
    %cst_111 = arith.constant 0.000000e+00 : f32
    %200 = vector.broadcast %cst_111 : f32 to vector<16x64xf32>
    %201 = arith.maximumf %199, %200 : vector<16x64xf32>
    %cst_112 = arith.constant 0.000000e+00 : f32
    %202 = vector.broadcast %cst_112 : f32 to vector<2x1x64xf32>
    %c0_113 = arith.constant 0 : index
    %c0_114 = arith.constant 0 : index
    %c0_115 = arith.constant 0 : index
    %203 = vector.load %arg26[%c0_113, %c0_114, %c0_115] : memref<2x10x64xf32, #tpu.memory_space<vmem>>, vector<2x1x64xf32>
    tpu.vector_store %arg26[%c0_113, %c0_114, %c0_115], %202 {strides = array<i32>} : memref<2x10x64xf32, #tpu.memory_space<vmem>>, vector<2x1x64xf32>,
    %cst_116 = arith.constant 0.000000e+00 : f32
    %204 = vector.broadcast %cst_116 : f32 to vector<2x1x64xf32>
    %c0_117 = arith.constant 0 : index
    %c9_118 = arith.constant 9 : index
    %c0_119 = arith.constant 0 : index
    %205 = vector.load %arg26[%c0_117, %c9_118, %c0_119] : memref<2x10x64xf32, #tpu.memory_space<vmem>>, vector<2x1x64xf32>
    tpu.vector_store %arg26[%c0_117, %c9_118, %c0_119], %204 {strides = array<i32>} : memref<2x10x64xf32, #tpu.memory_space<vmem>>, vector<2x1x64xf32>,
    %206 = vector.shape_cast %201 : vector<16x64xf32> to vector<2x8x64xf32>
    %c0_120 = arith.constant 0 : index
    %c1_121 = arith.constant 1 : index
    %c0_122 = arith.constant 0 : index
    %207 = vector.load %arg26[%c0_120, %c1_121, %c0_122] : memref<2x10x64xf32, #tpu.memory_space<vmem>>, vector<2x8x64xf32>
    tpu.vector_store %arg26[%c0_120, %c1_121, %c0_122], %206 {strides = array<i32>} : memref<2x10x64xf32, #tpu.memory_space<vmem>>, vector<2x8x64xf32>,
    %c0_123 = arith.constant 0 : index
    %c0_124 = arith.constant 0 : index
    %208 = vector.load %arg14[%c0_123, %c0_124] : memref<3x64xf32, #tpu.memory_space<vmem>>, vector<3x64xf32>
    %c0_125 = arith.constant 0 : index
    %c0_126 = arith.constant 0 : index
    %c0_127 = arith.constant 0 : index
    %209 = tpu.strided_load %arg26[%c0_125, %c0_126, %c0_127] {strides = array<i32: 1, 2, 1>} : memref<2x10x64xf32, #tpu.memory_space<vmem>>, vector<2x4x64xf32>
    %210 = vector.extract_strided_slice %208 {offsets = [0, 0], sizes = [1, 64], strides = [1, 1]} : vector<3x64xf32> to vector<1x64xf32>
    %211 = vector.shape_cast %210 : vector<1x64xf32> to vector<1x1x64xf32>
    %212 = vector.broadcast %211 : vector<1x1x64xf32> to vector<2x4x64xf32>
    %213 = arith.mulf %209, %212 : vector<2x4x64xf32>
    %c0_128 = arith.constant 0 : index
    %c1_129 = arith.constant 1 : index
    %c0_130 = arith.constant 0 : index
    %214 = tpu.strided_load %arg26[%c0_128, %c1_129, %c0_130] {strides = array<i32: 1, 2, 1>} : memref<2x10x64xf32, #tpu.memory_space<vmem>>, vector<2x4x64xf32>
    %215 = vector.extract_strided_slice %208 {offsets = [1, 0], sizes = [1, 64], strides = [1, 1]} : vector<3x64xf32> to vector<1x64xf32>
    %216 = vector.shape_cast %215 : vector<1x64xf32> to vector<1x1x64xf32>
    %217 = vector.broadcast %216 : vector<1x1x64xf32> to vector<2x4x64xf32>
    %218 = arith.mulf %214, %217 : vector<2x4x64xf32>
    %219 = arith.addf %213, %218 : vector<2x4x64xf32>
    %c0_131 = arith.constant 0 : index
    %c2_132 = arith.constant 2 : index
    %c0_133 = arith.constant 0 : index
    %220 = tpu.strided_load %arg26[%c0_131, %c2_132, %c0_133] {strides = array<i32: 1, 2, 1>} : memref<2x10x64xf32, #tpu.memory_space<vmem>>, vector<2x4x64xf32>
    %221 = vector.extract_strided_slice %208 {offsets = [2, 0], sizes = [1, 64], strides = [1, 1]} : vector<3x64xf32> to vector<1x64xf32>
    %222 = vector.shape_cast %221 : vector<1x64xf32> to vector<1x1x64xf32>
    %223 = vector.broadcast %222 : vector<1x1x64xf32> to vector<2x4x64xf32>
    %224 = arith.mulf %220, %223 : vector<2x4x64xf32>
    %225 = arith.addf %219, %224 : vector<2x4x64xf32>
    %226 = vector.shape_cast %225 : vector<2x4x64xf32> to vector<8x64xf32>
    %c0_134 = arith.constant 0 : index
    %c0_135 = arith.constant 0 : index
    %227 = vector.load %arg15[%c0_134, %c0_135] : memref<1x64xf32, #tpu.memory_space<vmem>>, vector<1x64xf32>
    %228 = vector.broadcast %227 : vector<1x64xf32> to vector<8x64xf32>
    %229 = arith.addf %226, %228 : vector<8x64xf32>
    %c0_136 = arith.constant 0 : index
    %c0_137 = arith.constant 0 : index
    %230 = vector.load %arg16[%c0_136, %c0_137] : memref<1x64xf32, #tpu.memory_space<vmem>>, vector<1x64xf32>
    %c0_138 = arith.constant 0 : index
    %c0_139 = arith.constant 0 : index
    %231 = vector.load %arg17[%c0_138, %c0_139] : memref<1x64xf32, #tpu.memory_space<vmem>>, vector<1x64xf32>
    %cst_140 = arith.constant dense<0.000000e+00> : vector<64xf32>
    %232 = vector.multi_reduction <add>, %229, %cst_140 [0] : vector<8x64xf32> to vector<64xf32>
    %233 = vector.shape_cast %232 : vector<64xf32> to vector<1x64xf32>
    %cst_141 = arith.constant 8.000000e+00 : f32
    %234 = vector.broadcast %cst_141 : f32 to vector<1x64xf32>
    %235 = arith.divf %233, %234 : vector<1x64xf32>
    %236 = vector.broadcast %235 : vector<1x64xf32> to vector<8x64xf32>
    %237 = arith.subf %229, %236 : vector<8x64xf32>
    %238 = arith.mulf %237, %237 : vector<8x64xf32>
    %cst_142 = arith.constant dense<0.000000e+00> : vector<64xf32>
    %239 = vector.multi_reduction <add>, %238, %cst_142 [0] : vector<8x64xf32> to vector<64xf32>
    %240 = vector.shape_cast %239 : vector<64xf32> to vector<1x64xf32>
    %cst_143 = arith.constant 8.000000e+00 : f32
    %241 = vector.broadcast %cst_143 : f32 to vector<1x64xf32>
    %242 = arith.divf %240, %241 : vector<1x64xf32>
    %cst_144 = arith.constant 9.99999974E-6 : f32
    %243 = vector.broadcast %cst_144 : f32 to vector<1x64xf32>
    %244 = arith.addf %242, %243 : vector<1x64xf32>
    %245 = math.rsqrt %244 : vector<1x64xf32>
    %246 = vector.broadcast %245 : vector<1x64xf32> to vector<8x64xf32>
    %247 = arith.mulf %237, %246 : vector<8x64xf32>
    %248 = vector.broadcast %230 : vector<1x64xf32> to vector<8x64xf32>
    %249 = arith.mulf %247, %248 : vector<8x64xf32>
    %250 = vector.broadcast %231 : vector<1x64xf32> to vector<8x64xf32>
    %251 = arith.addf %249, %250 : vector<8x64xf32>
    %cst_145 = arith.constant 0.000000e+00 : f32
    %252 = vector.broadcast %cst_145 : f32 to vector<8x64xf32>
    %253 = arith.maximumf %251, %252 : vector<8x64xf32>
    %254 = arith.truncf %253 : vector<8x64xf32> to vector<8x64xbf16>
    %c0_146 = arith.constant 0 : index
    %c0_147 = arith.constant 0 : index
    %255 = vector.load %arg18[%c0_146, %c0_147] : memref<64x128xbf16, #tpu.memory_space<vmem>>, vector<64x128xbf16>
    %cst_148 = arith.constant dense<0.000000e+00> : vector<8x128xf32>
    %256 = tpu.matmul %254, %255, %cst_148 {dimension_numbers = #tpu.dot_dimension_numbers<[1], [0], [0], [1], [0, 0, 1, 1], [], []>} : vector<8x64xbf16>, vector<64x128xbf16>, vector<8x128xf32> -> vector<8x128xf32>
    %c0_149 = arith.constant 0 : index
    %c0_150 = arith.constant 0 : index
    %257 = vector.load %arg19[%c0_149, %c0_150] : memref<1x128xf32, #tpu.memory_space<vmem>>, vector<1x128xf32>
    %258 = vector.broadcast %257 : vector<1x128xf32> to vector<8x128xf32>
    %259 = arith.addf %256, %258 : vector<8x128xf32>
    %c0_151 = arith.constant 0 : index
    %c0_152 = arith.constant 0 : index
    %260 = vector.load %arg20[%c0_151, %c0_152] : memref<1x128xf32, #tpu.memory_space<vmem>>, vector<1x128xf32>
    %c0_153 = arith.constant 0 : index
    %c0_154 = arith.constant 0 : index
    %261 = vector.load %arg21[%c0_153, %c0_154] : memref<1x128xf32, #tpu.memory_space<vmem>>, vector<1x128xf32>
    %cst_155 = arith.constant dense<0.000000e+00> : vector<128xf32>
    %262 = vector.multi_reduction <add>, %259, %cst_155 [0] : vector<8x128xf32> to vector<128xf32>
    %263 = vector.shape_cast %262 : vector<128xf32> to vector<1x128xf32>
    %cst_156 = arith.constant 8.000000e+00 : f32
    %264 = vector.broadcast %cst_156 : f32 to vector<1x128xf32>
    %265 = arith.divf %263, %264 : vector<1x128xf32>
    %266 = vector.broadcast %265 : vector<1x128xf32> to vector<8x128xf32>
    %267 = arith.subf %259, %266 : vector<8x128xf32>
    %268 = arith.mulf %267, %267 : vector<8x128xf32>
    %cst_157 = arith.constant dense<0.000000e+00> : vector<128xf32>
    %269 = vector.multi_reduction <add>, %268, %cst_157 [0] : vector<8x128xf32> to vector<128xf32>
    %270 = vector.shape_cast %269 : vector<128xf32> to vector<1x128xf32>
    %cst_158 = arith.constant 8.000000e+00 : f32
    %271 = vector.broadcast %cst_158 : f32 to vector<1x128xf32>
    %272 = arith.divf %270, %271 : vector<1x128xf32>
    %cst_159 = arith.constant 9.99999974E-6 : f32
    %273 = vector.broadcast %cst_159 : f32 to vector<1x128xf32>
    %274 = arith.addf %272, %273 : vector<1x128xf32>
    %275 = math.rsqrt %274 : vector<1x128xf32>
    %276 = vector.broadcast %275 : vector<1x128xf32> to vector<8x128xf32>
    %277 = arith.mulf %267, %276 : vector<8x128xf32>
    %278 = vector.broadcast %260 : vector<1x128xf32> to vector<8x128xf32>
    %279 = arith.mulf %277, %278 : vector<8x128xf32>
    %280 = vector.broadcast %261 : vector<1x128xf32> to vector<8x128xf32>
    %281 = arith.addf %279, %280 : vector<8x128xf32>
    %cst_160 = arith.constant 0.000000e+00 : f32
    %282 = vector.broadcast %cst_160 : f32 to vector<8x128xf32>
    %283 = arith.maximumf %281, %282 : vector<8x128xf32>
    %284 = vector.shape_cast %283 : vector<8x128xf32> to vector<2x4x128xf32>
    %cst_161 = arith.constant dense<0.000000e+00> : vector<2x128xf32>
    %285 = vector.multi_reduction <add>, %284, %cst_161 [1] : vector<2x4x128xf32> to vector<2x128xf32>
    %cst_162 = arith.constant 4.000000e+00 : f32
    %286 = vector.broadcast %cst_162 : f32 to vector<2x128xf32>
    %287 = arith.divf %285, %286 : vector<2x128xf32>
    %c0_163 = arith.constant 0 : index
    %c0_164 = arith.constant 0 : index
    %288 = vector.load %arg22[%c0_163, %c0_164] : memref<1x128xf32, #tpu.memory_space<vmem>>, vector<1x128xf32>
    %289 = vector.broadcast %288 : vector<1x128xf32> to vector<2x128xf32>
    %290 = arith.mulf %287, %289 : vector<2x128xf32>
    %cst_165 = arith.constant dense<0.000000e+00> : vector<2xf32>
    %291 = vector.multi_reduction <add>, %290, %cst_165 [1] : vector<2x128xf32> to vector<2xf32>
    %292 = vector.shape_cast %291 : vector<2xf32> to vector<2x1xf32>
    %c0_166 = arith.constant 0 : index
    %c0_167 = arith.constant 0 : index
    %293 = vector.load %arg23[%c0_166, %c0_167] : memref<1x1xf32, #tpu.memory_space<vmem>>, vector<1x1xf32>
    %294 = vector.broadcast %293 : vector<1x1xf32> to vector<2x1xf32>
    %295 = arith.addf %292, %294 : vector<2x1xf32>
    %c0_168 = arith.constant 0 : index
    %c0_169 = arith.constant 0 : index
    %296 = vector.load %arg24[%c0_168, %c0_169] : memref<2x1xf32, #tpu.memory_space<vmem>>, vector<2x1xf32>
    tpu.vector_store %arg24[%c0_168, %c0_169], %295 {strides = array<i32>} : memref<2x1xf32, #tpu.memory_space<vmem>>, vector<2x1xf32>,
    return
  }
}

</mosaic_0001>

<bundles_post_ra>
// kernel: eeg_mobilenet_forward.1
= control target key start
LH: loop header
LB: loop body
LE: loop exit
PB: predicated region body
PF: predicated region fallthrough
CT: control target
= control target key end

     0   :  { %v2693_v0 = vmov 0.0   ;;  %vm2694_vm0 = vmmov 0   ;;  %vm134_vm1 = vcmask 523264   ;;  %vm252_vm2 = vsmask.f32 3328  ;;  %s3546_s2 = inlined_call_operand.vmem [shape: bf16[15,64,32], index: 2, kind: input, shape index: {}]   ;;  %s3547_s1 = inlined_call_operand.vmem [shape: bf16[2,15,64], index: 1, kind: input, shape index: {}]   ;;  %s3548_s0 = inlined_call_operand.vmem [shape: bf16[2,15,64], index: 0, kind: input, shape index: {}]   ;;  %s3549_s10 = inlined_call_operand.vmem [shape: bf16[32,64], index: 10, kind: input, shape index: {}]   ;;  %s3550_s3 = inlined_call_operand.vmem [shape: f32[1,32], index: 3, kind: input, shape index: {}]   ;;  %s3551_s4 = inlined_call_operand.vmem [shape: f32[1,32], index: 4, kind: input, shape index: {}]   ;;  %s3552_s5 = inlined_call_operand.vmem [shape: f32[1,32], index: 5, kind: input, shape index: {}]   ;;  %s3553_s6 = inlined_call_operand.vmem [shape: f32[3,32], index: 6, kind: input, shape index: {}]   ;;  %s3554_s7 = inlined_call_operand.vmem [shape: f32[1,32], index: 7, kind: input, shape index: {}]   ;;  %s3555_s8 = inlined_call_operand.vmem [shape: f32[1,32], index: 8, kind: input, shape index: {}]   ;;  %s3556_s9 = inlined_call_operand.vmem [shape: f32[1,32], index: 9, kind: input, shape index: {}]   ;;  %s3557_s18 = inlined_call_operand.vmem [shape: bf16[64,128], index: 18, kind: input, shape index: {}]   ;;  %s3558_s11 = inlined_call_operand.vmem [shape: f32[1,64], index: 11, kind: input, shape index: {}]   ;;  %s3559_s12 = inlined_call_operand.vmem [shape: f32[1,64], index: 12, kind: input, shape index: {}]   ;;  %s3560_s13 = inlined_call_operand.vmem [shape: f32[1,64], index: 13, kind: input, shape index: {}]   ;;  %s3561_s14 = inlined_call_operand.vmem [shape: f32[3,64], index: 14, kind: input, shape index: {}]   ;;  %s3562_s15 = inlined_call_operand.vmem [shape: f32[1,64], index: 15, kind: input, shape index: {}]   ;;  %s3563_s16 = inlined_call_operand.vmem [shape: f32[1,64], index: 16, kind: input, shape index: {}]   ;;  %s3564_s17 = inlined_call_operand.vmem [shape: f32[1,64], index: 17, kind: input, shape index: {}]   ;;  %s3565_s23 = inlined_call_operand.<no memory space> [shape: f32[1,1], index: 23, kind: input, shape index: {}]   ;;  %s3566_s19 = inlined_call_operand.vmem [shape: f32[1,128], index: 19, kind: input, shape index: {}]   ;;  %s3567_s20 = inlined_call_operand.vmem [shape: f32[1,128], index: 20, kind: input, shape index: {}]   ;;  %s3568_s21 = inlined_call_operand.vmem [shape: f32[1,128], index: 21, kind: input, shape index: {}]   ;;  %s3569_s22 = inlined_call_operand.vmem [shape: f32[1,128], index: 22, kind: input, shape index: {}]   ;;  %s3570_s24 = inlined_call_operand.vmem [shape: f32[2,1], index: 24, kind: output, shape index: {}]  }
   0x1   :  { %3575 = sst [smem:[#allocation5_spill]] %s3546_s2  ;;  %2413 = vmatprep.subr.bf16.mxu0 %v2693_v0  ;;  %2425 = vmatprep.subr.bf16.mxu1 %v2693_v0  ;;  %vm253_vm3 = vsmask.f32 7440  ;;  %vm477_vm5 = vcmask 1042432   ;;  %vm478_vm6 = vcmask 1046532   ;;  %vm1251_vm11 = vcmask 1040384  }
   0x2   :  { %3576 = sst [smem:[#allocation6_spill]] %s3547_s1  ;;  %s3584_s27 = sld [smem:[#allocation5_spill]]  ;;  %2421 = vmatprep.mubr.msk.bf16.mxu0 %vm2694_vm0, %v2693_v0  ;;  %2433 = vmatprep.mubr.msk.bf16.mxu1 %vm2694_vm0, %v2693_v0  ;;  %vm2973_vm4 = vmor %vm252_vm2, %vm253_vm3  ;;  %vm662_vm8 = vsmask.f32 2304  ;;  %vm663_vm9 = vsmask.f32 6416 }
   0x3   :  { %3577 = sst [smem:[#allocation7_spill]] %s3548_s0  ;;  %s3585_s28 = sld [smem:[#allocation6_spill]]  ;;  %vm3025_vm7 = vmor %vm477_vm5, %vm478_vm6  ;;  %vm1252_vm12 = vcmask 1044484   ;;  %vm1052_vm13 = vsmask.f32 1280  ;;  %vm869_vm2 = vcmask 1041408  }
   0x4   :  { %3578 = sst [smem:[#allocation8_spill]] %s3549_s10  ;;  %s3586_s29 = sld [smem:[#allocation7_spill]]  ;;  %vm3093_vm10 = vmor %vm662_vm8, %vm663_vm9  ;;  %vm1053_vm14 = vsmask.f32 5392  ;;  %vm870_vm3 = vcmask 1045508   ;;  %vm1588_vm9 = vcmask 253952  }
   0x5   :  { %3579 = sst [smem:[#allocation9_spill]] %s3550_s3  ;;  %vm3151_vm15 = vmor %vm1052_vm13, %vm1053_vm14  ;;  %vm1434_vm6 = vsmask.f32 256  ;;  %1589 = vst.msk [vmem:[#allocation2] sm:$0x1] %vm1588_vm9, %v2693_v0 }
   0x6   :  { %3580 = sst [smem:[#allocation10_spill]] %s3551_s4  ;;  %vm3251_vm5 = vmor %vm869_vm2, %vm870_vm3  ;;  %1590 = vst.msk [vmem:[#allocation2 + $0x10] sm:$0x1] %vm1588_vm9, %v2693_v0  ;;  %s3601_s4 = sld [smem:[#allocation8_spill]] }
   0x7   :  { %3581 = sst [smem:[#allocation11_spill]] %s3552_s5  ;;  %1591 = vst.msk [vmem:[#allocation2 + $0x9] sm:$0x1] %vm1588_vm9, %v2693_v0  ;;  %1592 = vst.msk [vmem:[#allocation2 + $0x19] sm:$0x1] %vm1588_vm9, %v2693_v0  ;;  %s3602_s2 = sld [smem:[#allocation9_spill]] }
   0x8   :  { %3582 = sst [smem:[#allocation12_spill]] %s3553_s6  ;;  %v2615_v1 = vld [vmem:[%s3584_s27 + $0x20] sm:$0xff]   ;;  %v2617_v3 = vld [vmem:[%s3584_s27 + $0x28] sm:$0xff]   ;;  %v2619_v5 = vld [vmem:[%s3584_s27 + $0x30] sm:$0xff]   ;;  %s3603_s30 = sld [smem:[#allocation10_spill]] }
   0x9   :  { %3583 = sst [smem:[#allocation13_spill]] %s3554_s7  ;;  %v2616_v2 = vld [vmem:[%s3584_s27] sm:$0xff]   ;;  %2414 = vmatpush3.bf16.msra.mxu0 %v2615_v1  ;;  %v2618_v4 = vld [vmem:[%s3584_s27 + $0x8] sm:$0xff]   ;;  %v2620_v6 = vld [vmem:[%s3584_s27 + $0x10] sm:$0xff]   ;;  %s3604_s25 = sld [smem:[#allocation11_spill]] }
   0xa   :  { %2426 = vmatpush3.bf16.msra.mxu1 %v2616_v2  ;;  %2415 = vmatprep.subr.bf16.mxu0 %v2693_v0  ;;  %v2621_v7 = vld [vmem:[%s3584_s27 + $0x38] sm:$0xff]   ;;  %v2854_v8 = vld [vmem:[%s3585_s28] sm:$0xf]  ;;  %v2867_v11 = vld [vmem:[%s3585_s28 + $0x8] sm:$0xf]  ;;  %s3605_s1 = sld [smem:[#allocation12_spill]] }
   0xb   :  { %2427 = vmatprep.subr.bf16.mxu1 %v2693_v0  ;;  %v2859_v9 = vld [vmem:[%s3586_s29] sm:$0xf]  ;;  %v2622_v10 = vld [vmem:[%s3584_s27 + $0x18] sm:$0xff]   ;;  %v2872_v12 = vld [vmem:[%s3586_s29 + $0x4] sm:$0xf]  ;;  %v2097_v15 = vcombine.low %v2854_v8, %v2867_v11  ;;  %v2946_v35 = vshrl.u32 %v2854_v8, 16 }
   0xc   :  { %v2875_v13 = vshrl.u32 %v2859_v9, 16  ;;  %v2881_v14 = vld [vmem:[%s3586_s29 + $0x8] sm:$0xf]  ;;  %v2625_v17 = vld [vmem:[%s3584_s27 + $0x40] sm:$0xff]   ;;  %v2895_v18 = vld [vmem:[%s3586_s29 + $0xc] sm:$0xf] }
   0xd   :  { %2416 = vmatpush3.bf16.msra.mxu0 %v2617_v3  ;;  %v2887_v16 = vshrl.u32 %v2881_v14, 16  ;;  %v2103_v19 = vcombine.low %v2859_v9, %v2881_v14  ;;  %v2901_v21 = vshll.u32 %v2859_v9, 16  ;;  %v2626_v22 = vld [vmem:[%s3584_s27 + $0x60] sm:$0xff]   ;;  %v2908_v23 = vshll.u32 %v2872_v12, 16  ;;  %v2921_v26 = vld [vmem:[%s3585_s28 + $0xc] sm:$0xf] }
   0xe   :  { %2428 = vmatpush3.bf16.msra.mxu1 %v2618_v4  ;;  %2417 = vmatprep.subr.bf16.mxu0 %v2693_v0  ;;  %v258_v20 = vrot.slane %v2875_v13, 4  ;;  %v2915_v25 = vld [vmem:[%s3585_s28 + $0x4] sm:$0xf]  ;;  %v2627_v27 = vld [vmem:[%s3584_s27 + $0x48] sm:$0xff]   ;;  %v2934_v32 = vshll.u32 %v2881_v14, 16  ;;  %v2937_v33 = vshll.u32 %v2895_v18, 16 }
   0xf   :  { %2429 = vmatprep.subr.bf16.mxu1 %v2693_v0  ;;  %v261_v24 = vrot.slane %v2901_v21, 5  ;;  %v2628_v28 = vld [vmem:[%s3584_s27 + $0x68] sm:$0xff]   ;;  %v267_v30 = vrot.slane %v2908_v23, 5  ;;  %v272_v31 = vrot.slane %v2887_v16, 4  ;;  %v2629_v34 = vld [vmem:[%s3584_s27 + $0x50] sm:$0xff]   ;;  %v2949_v36 = vshll.u32 %v2854_v8, 16 }
  0x10   :  { %v2952_v37 = vshll.u32 %v2915_v25, 16  ;;  %v275_v39 = vrot.slane %v2934_v32, 5  ;;  %v2958_v40 = vshrl.u32 %v2867_v11, 16  ;;  %v2961_v41 = vshll.u32 %v2867_v11, 16  ;;  %v2630_v46 = vld [vmem:[%s3584_s27 + $0x70] sm:$0xff]   ;;  %v2631_v56 = vld [vmem:[%s3584_s27 + $0x58] sm:$0xff]  }
  0x11   :  { %2418 = vmatpush3.bf16.msra.mxu0 %v2619_v5  ;;  %v262_v29 = vor.u32 %v261_v24, %v258_v20  ;;  %v281_v42 = vrot.slane %v2937_v33, 5  ;;  %v368_v43 = vrot.slane %v2946_v35, 4  ;;  %v371_v44 = vrot.slane %v2949_v36, 5  ;;  %v2632_v59 = vld [vmem:[%s3584_s27 + $0x78] sm:$0xff]   ;;  %v2633_v2 = vld [vmem:[%s3584_s27 + $0x80] sm:$0xff]   ;;  %v2635_v5 = vld [vmem:[%s3584_s27 + $0x88] sm:$0xff]  }
  0x12   :  { %2430 = vmatpush3.bf16.msra.mxu1 %v2620_v6  ;;  %2419 = vmatprep.subr.bf16.mxu0 %v2693_v0  ;;  %v377_v45 = vrot.slane %v2952_v37, 5  ;;  %v276_v48 = vor.u32 %v275_v39, %v272_v31  ;;  %v382_v49 = vrot.slane %v2958_v40, 4  ;;  %v385_v50 = vrot.slane %v2961_v41, 5  ;;  %v2634_v4 = vld [vmem:[%s3584_s27 + $0xa0] sm:$0xff]   ;;  %v2636_v6 = vld [vmem:[%s3584_s27 + $0xa8] sm:$0xff]   ;;  %v2638_v24 = vld [vmem:[%s3584_s27 + $0xb0] sm:$0xff]  }
  0x13   :  { %2431 = vmatprep.subr.bf16.mxu1 %v2693_v0  ;;  %v263_v38 = vrot.slane %v262_v29, 4  ;;  %v2980_v51 = vshll.u32 %v2921_v26, 16  ;;  %v372_v52 = vor.u32 %v371_v44, %v368_v43  ;;  %v486_v20 = vrot.slane %v2895_v18, 5  ;;  %s3606_s26 = sld [smem:[#allocation13_spill]] }
  0x14   :  { %v277_v53 = vrot.slane %v276_v48, 4  ;;  %v386_v54 = vor.u32 %v385_v50, %v382_v49  ;;  %v2154_v29 = vrot.slane %v2867_v11, 9  ;;  %v665_v31 = vrot.slane %v2875_v13, 5 }
  0x15   :  { %2420 = vmatpush3.bf16.msra.mxu0 %v2621_v7  ;;  %v391_v55 = vrot.slane %v2980_v51, 5  ;;  %v268_v57 = vsel %vm2973_vm4, %v263_v38, %v267_v30  ;;  %v373_v58 = vrot.slane %v372_v52, 4  ;;  %v2137_v7 = vrot.slane %v2859_v9, 9  ;;  %v2639_v38 = vld [vmem:[%s3584_s27 + $0x98] sm:$0xff]  }
  0x16   :  { %2432 = vmatpush3.bf16.msra.mxu1 %v2622_v10  ;;  %2437 = vmatprep.subr.bf16.mxu0 %v2693_v0  ;;  %v282_v60 = vsel %vm2973_vm4, %v277_v53, %v281_v42  ;;  %v387_v61 = vrot.slane %v386_v54, 4  ;;  %v482_v10 = vrot.slane %v2872_v12, 5  ;;  %v578_v30 = vrot.slane %v2921_v26, 5 }
  0x17   :  { %2449 = vmatprep.subr.bf16.mxu1 %v2693_v0  ;;  %v378_v62 = vsel %vm2973_vm4, %v373_v58, %v377_v45  ;;  %v2117_v63 = vcombine.low %v268_v57, %v282_v60  ;;  %v672_v43 = vrot.slane %v2908_v23, 6  ;;  %v3055_v44 = vshrl.u32 %v2895_v18, 16  ;;  %v2640_v45 = vld [vmem:[%s3584_s27 + $0xb8] sm:$0xff]   ;;  %v2641_v57 = vld [vmem:[%s3584_s27 + $0xc0] sm:$0xff]  }
  0x18   :  { %2422 = vmatmul.mubr.msk.bf16.vlgmr.msra.gmra.mrb[0].mxu0 %vm134_vm1, %v2097_v15  ;;  %v392_v1 = vsel %vm2973_vm4, %v387_v61, %v391_v55  ;;  %v3023_v15 = vshrl.u32 %v2872_v12, 16  ;;  %v483_v39 = vsel %vm3025_vm7, %v2137_v7, %v482_v10  ;;  %v675_v47 = vrot.slane %v2887_v16, 5  ;;  %vm3198_vm4 = vmor %vm1251_vm11, %vm1252_vm12 }
  0x19   :  { %2434 = vmatmul.mubr.msk.bf16.vlgmr.msra.gmra.mrb[0].mxu1 %vm134_vm1, %v2103_v19  ;;  %2438 = vmatpush3.bf16.msra.mxu0 %v2625_v17  ;;  %v2131_v3 = vcombine.low %v378_v62, %v392_v1  ;;  %v2138_v19 = vrot.slane %v2881_v14, 9  ;;  %v676_v48 = vrot.slane %v2934_v32, 6  ;;  %v682_v50 = vrot.slane %v2937_v33, 6  ;;  %v2649_v17 = vld [vmem:[%s3584_s27 + $0x100] sm:$0xff]  }
  0x1a   :  { %2450 = vmatpush3.bf16.msra.mxu1 %v2626_v22  ;;  %2439 = vmatprep.subr.bf16.mxu0 %v2693_v0  ;;  %v2637_v22 = vld [vmem:[%s3584_s27 + $0x90] sm:$0xff]   ;;  %v671_v42 = vrot.slane %v3023_v15, 5  ;;  %v767_v52 = vrot.slane %v2946_v35, 5  ;;  %v579_v53 = vsel %vm3025_vm7, %v2154_v29, %v578_v30  ;;  %v768_v55 = vrot.slane %v2949_v36, 6 }
  0x1b   :  { %2451 = vmatprep.subr.bf16.mxu1 %v2693_v0  ;;  %2445 = vmatprep.mubr.msk.bf16.mxu0 %vm2694_vm0, %v2693_v0  ;;  %v681_v58 = vrot.slane %v3055_v44, 5  ;;  %v677_v61 = vor.u32 %v676_v48, %v675_v47  ;;  %v778_v62 = vrot.slane %v2961_v41, 6  ;;  %v774_v7 = vrot.slane %v2952_v37, 6  ;;  %v2646_v47 = vld [vmem:[%s3584_s27 + $0xf0] sm:$0xff]  }
  0x1c   :  { %2457 = vmatprep.mubr.msk.bf16.mxu1 %vm2694_vm0, %v2693_v0  ;;  %v784_v10 = vrot.slane %v2980_v51, 6  ;;  %vm1797_vm11 = vcmask 516096   ;;  %vm2083_vm12 = vcmask 1024  }
  0x1d   :  { %2440 = vmatpush3.bf16.msra.mxu0 %v2627_v27  ;;  %v2153_v27 = vrot.slane %v2854_v8, 9  ;;  %1798 = vst.msk [vmem:[#allocation3] sm:$0x1] %vm1797_vm11, %v2693_v0  ;;  %1799 = vst.msk [vmem:[#allocation3 + $0x10] sm:$0x1] %vm1797_vm11, %v2693_v0 }
  0x1e   :  { %2452 = vmatpush3.bf16.msra.mxu1 %v2628_v28  ;;  %2441 = vmatprep.subr.bf16.mxu0 %v2693_v0  ;;  %v574_v28 = vrot.slane %v2915_v25, 5 }
  0x1f   :  { %2453 = vmatprep.subr.bf16.mxu1 %v2693_v0 }
  0x20   :  { %v575_v49 = vsel %vm3025_vm7, %v2153_v27, %v574_v28  ;;  %v2643_v27 = vld [vmem:[%s3584_s27 + $0xc8] sm:$0xff]  }
  0x21   :  { %2442 = vmatpush3.bf16.msra.mxu0 %v2629_v34  ;;  %v666_v34 = vrot.slane %v2901_v21, 6  ;;  %v2163_v1 = vcombine.low %v575_v49, %v579_v53  ;;  %v2644_v28 = vld [vmem:[%s3584_s27 + $0xe8] sm:$0xff]   ;;  %v1060_v49 = vrot.slane %v2908_v23, 7  ;;  %v1063_v53 = vrot.slane %v2887_v16, 6 }
  0x22   :  { %2454 = vmatpush3.bf16.msra.mxu1 %v2630_v46  ;;  %2443 = vmatprep.subr.bf16.mxu0 %v2693_v0  ;;  %v487_v46 = vsel %vm3025_vm7, %v2138_v19, %v486_v20  ;;  %v678_v19 = vrot.slane %v677_v61, 4  ;;  %v683_v20 = vor.u32 %v682_v50, %v681_v58  ;;  %v2648_v58 = vld [vmem:[%s3584_s27 + $0xf8] sm:$0xff]   ;;  %v1067_v61 = vrot.slane %v3055_v44, 6 }
  0x23   :  { %2455 = vmatprep.subr.bf16.mxu1 %v2693_v0  ;;  %v667_v54 = vor.u32 %v666_v34, %v665_v31  ;;  %v2147_v60 = vcombine.low %v483_v39, %v487_v46  ;;  %v1055_v34 = vrot.slane %v2875_v13, 6  ;;  %v1059_v46 = vrot.slane %v3023_v15, 6 }
  0x24   :  { %vm1435_vm7 = vsmask.f32 4368 }
  0x25   :  { %2444 = vmatpush3.bf16.msra.mxu0 %v2631_v56  ;;  %v771_v56 = vshrl.u32 %v2915_v25, 16  ;;  %vm3264_vm8 = vmor %vm1434_vm6, %vm1435_vm7 }
  0x26   :  { %2456 = vmatpush3.bf16.msra.mxu1 %v2632_v59  ;;  %2461 = vmatprep.subr.bf16.mxu0 %v2693_v0  ;;  %v777_v59 = vrot.slane %v2958_v40, 5 }
  0x27   :  { %2473 = vmatprep.subr.bf16.mxu1 %v2693_v0 }
  0x28   :  { %2446 = vmatmul.mubr.msk.bf16.vlgmr.msra.gmra.mrb[4].mxu0 %vm134_vm1, %v2117_v63  ;;  %v781_v63 = vshrl.u32 %v2921_v26, 16 }
  0x29   :  { %2462 = vmatpush3.bf16.msra.mxu0 %v2633_v2  ;;  %2458 = vmatmul.mubr.msk.bf16.vlgmr.msra.gmra.mrb[4].mxu1 %vm134_vm1, %v2131_v3  ;;  %v2642_v2 = vld [vmem:[%s3584_s27 + $0xe0] sm:$0xff]   ;;  %v668_v3 = vrot.slane %v667_v54, 4  ;;  %v2647_v54 = vld [vmem:[%s3584_s27 + $0xd8] sm:$0xff]  }
  0x2a   :  { %2474 = vmatpush3.bf16.msra.mxu1 %v2634_v4  ;;  %2463 = vmatprep.subr.bf16.mxu0 %v2693_v0  ;;  %v673_v4 = vor.u32 %v672_v43, %v671_v42  ;;  %v1056_v43 = vrot.slane %v2901_v21, 7 }
  0x2b   :  { %2475 = vmatprep.subr.bf16.mxu1 %v2693_v0  ;;  %2469 = vmatprep.mubr.msk.bf16.mxu0 %vm2694_vm0, %v2693_v0 }
  0x2c   :  { %2481 = vmatprep.mubr.msk.bf16.mxu1 %vm2694_vm0, %v2693_v0  ;;  %v3112_v29 = vsel %vm3093_vm10, %v668_v3, %v673_v4  ;;  %v1057_v48 = vor.u32 %v1056_v43, %v1055_v34  ;;  %v1153_v3 = vrot.slane %v2946_v35, 6  ;;  %v1154_v4 = vrot.slane %v2949_v36, 7 }
  0x2d   :  { %2464 = vmatpush3.bf16.msra.mxu0 %v2635_v5  ;;  %v769_v5 = vor.u32 %v768_v55, %v767_v52  ;;  %v2197_v52 = vrot.slane %v2859_v9, 10  ;;  %v1162_v36 = vrot.slane %v2961_v41, 7  ;;  %v2198_v41 = vrot.slane %v2881_v14, 10 }
  0x2e   :  { %2476 = vmatpush3.bf16.msra.mxu1 %v2636_v6  ;;  %2465 = vmatprep.subr.bf16.mxu0 %v2693_v0  ;;  %v773_v6 = vrot.slane %v771_v56, 5  ;;  %v1155_v35 = vor.u32 %v1154_v4, %v1153_v3  ;;  %v2257_v43 = vrot.slane %v2859_v9, 11 }
  0x2f   :  { %2477 = vmatprep.subr.bf16.mxu1 %v2693_v0  ;;  %v770_v30 = vrot.slane %v769_v5, 4 }
  0x30   :  { %v775_v31 = vor.u32 %v774_v7, %v773_v6  ;;  %v1158_v7 = vrot.slane %v2952_v37, 7  ;;  %v2650_v37 = vld [vmem:[%s3584_s27 + $0x120] sm:$0xff]  }
  0x31   :  { %2466 = vmatpush3.bf16.msra.mxu0 %v2637_v22  ;;  %v779_v22 = vor.u32 %v778_v62, %v777_v59  ;;  %v1061_v59 = vor.u32 %v1060_v49, %v1059_v46  ;;  %v1068_v62 = vrot.slane %v2937_v33, 7  ;;  %v1260_v49 = vrot.slane %v2895_v18, 7 }
  0x32   :  { %2478 = vmatpush3.bf16.msra.mxu1 %v2638_v24  ;;  %2467 = vmatprep.subr.bf16.mxu0 %v2693_v0  ;;  %v783_v24 = vrot.slane %v781_v63, 5  ;;  %v776_v50 = vsel %vm3093_vm10, %v770_v30, %v775_v31  ;;  %v878_v30 = vrot.slane %v2895_v18, 6  ;;  %v2654_v18 = vld [vmem:[%s3584_s27 + $0x130] sm:$0xff]  }
  0x33   :  { %2479 = vmatprep.subr.bf16.mxu1 %v2693_v0  ;;  %v780_v39 = vrot.slane %v779_v22, 4  ;;  %v1069_v6 = vor.u32 %v1068_v62, %v1067_v61 }
  0x34   :  { %v785_v42 = vor.u32 %v784_v10, %v783_v24  ;;  %v1161_v10 = vrot.slane %v2958_v40, 6 }
  0x35   :  { %2468 = vmatpush3.bf16.msra.mxu0 %v2639_v38  ;;  %v3117_v38 = vsel %vm3093_vm10, %v678_v19, %v683_v20  ;;  %v1166_v19 = vrot.slane %v2980_v51, 7 }
  0x36   :  { %2480 = vmatpush3.bf16.msra.mxu1 %v2640_v45  ;;  %2485 = vmatprep.subr.bf16.mxu0 %v2693_v0  ;;  %v2645_v45 = vld [vmem:[%s3584_s27 + $0xd0] sm:$0xff]   ;;  %v2177_v21 = vcombine.low %v3112_v29, %v3117_v38  ;;  %v786_v55 = vsel %vm3093_vm10, %v780_v39, %v785_v42  ;;  %v2213_v39 = vrot.slane %v2854_v8, 10  ;;  %vm1540_vm10 = vcmask 261120  }
  0x37   :  { %2497 = vmatprep.subr.bf16.mxu1 %v2693_v0  ;;  %v2191_v20 = vcombine.low %v776_v50, %v786_v55  ;;  %v964_v55 = vrot.slane %v2915_v25, 6 }
  0x38   :  { %2470 = vmatmul.mubr.msk.bf16.vlgmr.msra.gmra.mrb[8].mxu0 %vm134_vm1, %v2147_v60  ;;  %v1064_v60 = vrot.slane %v2934_v32, 7  ;;  %v1157_v32 = vrot.slane %v771_v56, 6  ;;  %v1165_v56 = vrot.slane %v781_v63, 6  ;;  %v1156_v63 = vrot.slane %v1155_v35, 4 }
  0x39   :  { %2486 = vmatpush3.bf16.msra.mxu0 %v2641_v57  ;;  %2482 = vmatmul.mubr.msk.bf16.vlgmr.msra.gmra.mrb[8].mxu1 %vm134_vm1, %v2163_v1  ;;  %v1058_v57 = vrot.slane %v1057_v48, 4  ;;  %v874_v1 = vrot.slane %v2872_v12, 6  ;;  %v2258_v48 = vrot.slane %v2881_v14, 11  ;;  %v2274_v14 = vrot.slane %v2867_v11, 11 }
  0x3a   :  { %2498 = vmatpush3.bf16.msra.mxu1 %v2642_v2  ;;  %2487 = vmatprep.subr.bf16.mxu0 %v2693_v0  ;;  %v1065_v5 = vor.u32 %v1064_v60, %v1063_v53  ;;  %v1159_v24 = vor.u32 %v1158_v7, %v1157_v32  ;;  %v1167_v51 = vor.u32 %v1166_v19, %v1165_v56  ;;  %v2273_v53 = vrot.slane %v2854_v8, 11  ;;  %v2660_v56 = vld [vmem:[%s3584_s27 + $0x168] sm:$0xff]   ;;  %v2661_v19 = vld [vmem:[%s3584_s27 + $0x150] sm:$0xff]  }
  0x3b   :  { %2499 = vmatprep.subr.bf16.mxu1 %v2693_v0  ;;  %2493 = vmatprep.mubr.msk.bf16.mxu0 %vm2694_vm0, %v2693_v0  ;;  %v3174_v40 = vsel %vm3151_vm15, %v1058_v57, %v1061_v59  ;;  %v3237_v8 = vsel %vm3198_vm4, %v2258_v48, %v1260_v49  ;;  %v2214_v59 = vrot.slane %v2867_v11, 10  ;;  %v968_v60 = vrot.slane %v2921_v26, 6 }
  0x3c   :  { %2505 = vmatprep.mubr.msk.bf16.mxu1 %vm2694_vm0, %v2693_v0  ;;  %v1066_v22 = vrot.slane %v1065_v5, 4  ;;  %v3192_v34 = vsel %vm3151_vm15, %v1156_v63, %v1159_v24  ;;  %v1439_v2 = vrot.slane %v3023_v15, 7  ;;  %v2290_v5 = vrot.slane %v2887_v16, 11  ;;  %v2665_v24 = vld [vmem:[%s3584_s27 + $0x180] sm:$0xff]   ;;  %v2667_v63 = vld [vmem:[%s3584_s27 + $0x188] sm:$0xff]  }
  0x3d   :  { %2488 = vmatpush3.bf16.msra.mxu0 %v2643_v27  ;;  %v1163_v27 = vor.u32 %v1162_v36, %v1161_v10  ;;  %v875_v15 = vsel %vm3251_vm5, %v2197_v52, %v874_v1  ;;  %v879_v7 = vsel %vm3251_vm5, %v2198_v41, %v878_v30  ;;  %v965_v16 = vsel %vm3251_vm5, %v2213_v39, %v964_v55  ;;  %v2657_v10 = vld [vmem:[%s3584_s27 + $0x140] sm:$0xff]   ;;  %v2659_v36 = vld [vmem:[%s3584_s27 + $0x148] sm:$0xff]  }
  0x3e   :  { %2500 = vmatpush3.bf16.msra.mxu1 %v2644_v28  ;;  %2489 = vmatprep.subr.bf16.mxu0 %v2693_v0  ;;  %v2651_v28 = vld [vmem:[%s3584_s27 + $0x108] sm:$0xff]   ;;  %v3184_v29 = vsel %vm3151_vm15, %v1066_v22, %v1069_v6  ;;  %v1440_v32 = vor.u32 %v1439_v2, %v2908_v23  ;;  %v1444_v6 = vrot.slane %v3055_v44, 7  ;;  %v2656_v23 = vld [vmem:[%s3584_s27 + $0x138] sm:$0xff]   ;;  %v2207_v52 = vcombine.low %v875_v15, %v879_v7  ;;  %v2666_v41 = vld [vmem:[%s3584_s27 + $0x1a0] sm:$0xff]  }
  0x3f   :  { %2501 = vmatprep.subr.bf16.mxu1 %v2693_v0  ;;  %v2237_v31 = vcombine.low %v3174_v40, %v3184_v29  ;;  %v1164_v38 = vrot.slane %v1163_v27, 4  ;;  %v2664_v22 = vld [vmem:[%s3584_s27 + $0x178] sm:$0xff]   ;;  %v2668_v27 = vld [vmem:[%s3584_s27 + $0x1a8] sm:$0xff]   ;;  %v2669_v40 = vld [vmem:[%s3584_s27 + $0x190] sm:$0xff]  }
  0x40   :  { %v1445_v44 = vor.u32 %v1444_v6, %v2937_v33  ;;  %v2658_v33 = vld [vmem:[%s3584_s27 + $0x160] sm:$0xff]   ;;  %v2672_v29 = vld [vmem:[%s3584_s27 + $0x1b8] sm:$0xff]  }
  0x41   :  { %2490 = vmatpush3.bf16.msra.mxu0 %v2645_v45  ;;  %v2652_v45 = vld [vmem:[%s3584_s27 + $0x128] sm:$0xff]   ;;  %v3209_v46 = vsel %vm3151_vm15, %v1164_v38, %v1167_v51  ;;  %v2670_v51 = vld [vmem:[%s3584_s27 + $0x1b0] sm:$0xff]   ;;  %v2673_v30 = vld [vmem:[%s3584_s27 + $0x1c0] sm:$0xff]  }
  0x42   :  { %2502 = vmatpush3.bf16.msra.mxu1 %v2646_v47  ;;  %2491 = vmatprep.subr.bf16.mxu0 %v2693_v0  ;;  %v1256_v47 = vrot.slane %v2872_v12, 7  ;;  %v2251_v50 = vcombine.low %v3192_v34, %v3209_v46  ;;  %v969_v12 = vsel %vm3251_vm5, %v2214_v59, %v968_v60  ;;  %v3298_v1 = vsel %vm3264_vm8, %v2290_v5, %v1445_v44  ;;  %v2675_v34 = vld [vmem:[%s3584_s27 + $0x1d0] sm:$0xff]   ;;  %v2676_v38 = vld [vmem:[%s3584_s27 + $0x1d8] sm:$0xff]  }
  0x43   :  { %2503 = vmatprep.subr.bf16.mxu1 %v2693_v0 }
  0x44   :  { %v3233_v57 = vsel %vm3198_vm4, %v2257_v43, %v1256_v47 }
  0x45   :  { %2492 = vmatpush3.bf16.msra.mxu0 %v2647_v54  ;;  %v1346_v54 = vrot.slane %v2915_v25, 7  ;;  %v2267_v61 = vcombine.low %v3233_v57, %v3237_v8 }
  0x46   :  { %2504 = vmatpush3.bf16.msra.mxu1 %v2648_v58  ;;  %2509 = vmatprep.subr.bf16.mxu0 %v2693_v0  ;;  %v1350_v58 = vrot.slane %v2921_v26, 7  ;;  %v2289_v26 = vrot.slane %v2875_v13, 11  ;;  %v2655_v13 = vld [vmem:[%s3584_s27 + $0x118] sm:$0xff]  }
  0x47   :  { %2521 = vmatprep.subr.bf16.mxu1 %v2693_v0  ;;  %v3246_v25 = vsel %vm3198_vm4, %v2273_v53, %v1346_v54 }
  0x48   :  { %2494 = vmatmul.mubr.msk.bf16.vlgmr.msra.gmra.mrb[12].mxu0 %vm134_vm1, %v2177_v21  ;;  %v2653_v21 = vld [vmem:[%s3584_s27 + $0x110] sm:$0xff]   ;;  %v3257_v11 = vsel %vm3198_vm4, %v2274_v14, %v1350_v58  ;;  %v3292_v9 = vsel %vm3264_vm8, %v2289_v26, %v1440_v32 }
  0x49   :  { %2510 = vmatpush3.bf16.msra.mxu0 %v2649_v17  ;;  %2506 = vmatmul.mubr.msk.bf16.vlgmr.msra.gmra.mrb[12].mxu1 %vm134_vm1, %v2191_v20  ;;  %v2283_v3 = vcombine.low %v3246_v25, %v3257_v11  ;;  %v2223_v17 = vcombine.low %v965_v16, %v969_v12  ;;  %v2299_v35 = vcombine.low %v3292_v9, %v3298_v1  ;;  %v2662_v20 = vld [vmem:[%s3584_s27 + $0x170] sm:$0xff]  }
  0x4a   :  { %2522 = vmatpush3.bf16.msra.mxu1 %v2650_v37  ;;  %2511 = vmatprep.subr.bf16.mxu0 %v2693_v0  ;;  %v2663_v37 = vld [vmem:[%s3584_s27 + $0x158] sm:$0xff]  }
  0x4b   :  { %2523 = vmatprep.subr.bf16.mxu1 %v2693_v0  ;;  %2517 = vmatprep.mubr.msk.bf16.mxu0 %vm2694_vm0, %v2693_v0 }
  0x4c   :  { %2529 = vmatprep.mubr.msk.bf16.mxu1 %vm2694_vm0, %v2693_v0 }
  0x4d   :  { %2512 = vmatpush3.bf16.msra.mxu0 %v2651_v28  ;;  %v2671_v28 = vld [vmem:[%s3584_s27 + $0x198] sm:$0xff]  }
  0x4e   :  { %2524 = vmatpush3.bf16.msra.mxu1 %v2652_v45  ;;  %2513 = vmatprep.subr.bf16.mxu0 %v2693_v0 }
  0x4f   :  { %2525 = vmatprep.subr.bf16.mxu1 %v2693_v0 }
  0x51   :  { %2514 = vmatpush3.bf16.msra.mxu0 %v2653_v21 }
  0x52   :  { %2526 = vmatpush3.bf16.msra.mxu1 %v2654_v18  ;;  %2515 = vmatprep.subr.bf16.mxu0 %v2693_v0 }
  0x53   :  { %2527 = vmatprep.subr.bf16.mxu1 %v2693_v0 }
  0x55   :  { %2516 = vmatpush3.bf16.msra.mxu0 %v2655_v13 }
  0x56   :  { %2528 = vmatpush3.bf16.msra.mxu1 %v2656_v23  ;;  %2533 = vmatprep.subr.bf16.mxu0 %v2693_v0 }
  0x57   :  { %2545 = vmatprep.subr.bf16.mxu1 %v2693_v0 }
  0x58   :  { %2518 = vmatmul.mubr.msk.bf16.vlgmr.msra.gmra.mrb[16].mxu0 %vm134_vm1, %v2207_v52 }
  0x59   :  { %2534 = vmatpush3.bf16.msra.mxu0 %v2657_v10  ;;  %2530 = vmatmul.mubr.msk.bf16.vlgmr.msra.gmra.mrb[16].mxu1 %vm134_vm1, %v2223_v17 }
  0x5a   :  { %2546 = vmatpush3.bf16.msra.mxu1 %v2658_v33  ;;  %2535 = vmatprep.subr.bf16.mxu0 %v2693_v0 }
  0x5b   :  { %2547 = vmatprep.subr.bf16.mxu1 %v2693_v0  ;;  %2541 = vmatprep.mubr.msk.bf16.mxu0 %vm2694_vm0, %v2693_v0 }
  0x5c   :  { %2553 = vmatprep.mubr.msk.bf16.mxu1 %vm2694_vm0, %v2693_v0 }
  0x5d   :  { %2536 = vmatpush3.bf16.msra.mxu0 %v2659_v36  ;;  %v2677_v36 = vld [vmem:[%s3601_s4] sm:$0xff]  }
  0x5e   :  { %2548 = vmatpush3.bf16.msra.mxu1 %v2660_v56  ;;  %2537 = vmatprep.subr.bf16.mxu0 %v2693_v0 }
  0x5f   :  { %2549 = vmatprep.subr.bf16.mxu1 %v2693_v0 }
  0x61   :  { %2538 = vmatpush3.bf16.msra.mxu0 %v2661_v19  ;;  %v2678_v19 = vld [vmem:[%s3601_s4 + $0x8] sm:$0xff]  }
  0x62   :  { %2550 = vmatpush3.bf16.msra.mxu1 %v2662_v20  ;;  %2539 = vmatprep.subr.bf16.mxu0 %v2693_v0 }
  0x63   :  { %2551 = vmatprep.subr.bf16.mxu1 %v2693_v0 }
  0x65   :  { %2540 = vmatpush3.bf16.msra.mxu0 %v2663_v37 }
  0x66   :  { %2552 = vmatpush3.bf16.msra.mxu1 %v2664_v22  ;;  %2557 = vmatprep.subr.bf16.mxu0 %v2693_v0 }
  0x67   :  { %2569 = vmatprep.subr.bf16.mxu1 %v2693_v0 }
  0x68   :  { %2542 = vmatmul.mubr.msk.bf16.vlgmr.msra.gmra.mrb[20].mxu0 %vm134_vm1, %v2237_v31  ;;  %v2674_v31 = vld [vmem:[%s3584_s27 + $0x1c8] sm:$0xff]  }
  0x69   :  { %2558 = vmatpush3.bf16.msra.mxu0 %v2665_v24  ;;  %2554 = vmatmul.mubr.msk.bf16.vlgmr.msra.gmra.mrb[20].mxu1 %vm134_vm1, %v2251_v50 }
  0x6a   :  { %2570 = vmatpush3.bf16.msra.mxu1 %v2666_v41  ;;  %2559 = vmatprep.subr.bf16.mxu0 %v2693_v0 }
  0x6b   :  { %2571 = vmatprep.subr.bf16.mxu1 %v2693_v0  ;;  %2565 = vmatprep.mubr.msk.bf16.mxu0 %vm2694_vm0, %v2693_v0 }
  0x6c   :  { %2577 = vmatprep.mubr.msk.bf16.mxu1 %vm2694_vm0, %v2693_v0 }
  0x6d   :  { %2560 = vmatpush3.bf16.msra.mxu0 %v2667_v63 }
  0x6e   :  { %2572 = vmatpush3.bf16.msra.mxu1 %v2668_v27  ;;  %2561 = vmatprep.subr.bf16.mxu0 %v2693_v0 }
  0x6f   :  { %2573 = vmatprep.subr.bf16.mxu1 %v2693_v0 }
  0x71   :  { %2562 = vmatpush3.bf16.msra.mxu0 %v2669_v40 }
  0x72   :  { %2574 = vmatpush3.bf16.msra.mxu1 %v2670_v51  ;;  %2563 = vmatprep.subr.bf16.mxu0 %v2693_v0 }
  0x73   :  { %2575 = vmatprep.subr.bf16.mxu1 %v2693_v0 }
  0x75   :  { %2564 = vmatpush3.bf16.msra.mxu0 %v2671_v28 }
  0x76   :  { %2576 = vmatpush3.bf16.msra.mxu1 %v2672_v29  ;;  %2581 = vmatprep.subr.bf16.mxu0 %v2693_v0 }
  0x77   :  { %2593 = vmatprep.subr.bf16.mxu1 %v2693_v0 }
  0x78   :  { %2566 = vmatmul.mubr.msk.bf16.vlgmr.msra.gmra.mrb[24].mxu0 %vm134_vm1, %v2267_v61 }
  0x79   :  { %2582 = vmatpush3.bf16.msra.mxu0 %v2673_v30  ;;  %2578 = vmatmul.mubr.msk.bf16.vlgmr.msra.gmra.mrb[24].mxu1 %vm134_vm1, %v2283_v3 }
  0x7a   :  { %2583 = vmatprep.subr.bf16.mxu0 %v2693_v0  ;;  %2589 = vmatprep.mubr.msk.bf16.mxu0 %vm2694_vm0, %v2693_v0 }
  0x7b   :  { %2597 = vmatprep.mubr.msk.bf16.mxu1 %vm2694_vm0, %v2693_v0  ;;  %2594 = vmatpush3.bf16.msra.mxu1 %v2677_v36 }
  0x7c   :  { %2595 = vmatprep.subr.bf16.mxu1 %v2693_v0 }
  0x7d   :  { %2584 = vmatpush3.bf16.msra.mxu0 %v2674_v31 }
  0x7e   :  { %2585 = vmatprep.subr.bf16.mxu0 %v2693_v0 }
  0x7f   :  { %2596 = vmatpush3.bf16.msra.mxu1 %v2678_v19 }
  0x80   :  { %2601 = vmatprep.subr.bf16.mxu1 %v2693_v0 }
  0x81   :  { %2586 = vmatpush3.bf16.msra.mxu0 %v2675_v34 }
  0x82   :  { %2587 = vmatprep.subr.bf16.mxu0 %v2693_v0 }
  0x85   :  { %2588 = vmatpush3.bf16.msra.mxu0 %v2676_v38 }
  0x88   :  { %2590 = vmatmul.mubr.msk.bf16.vlgmr.msra.gmra.mrb[28].mxu0 %vm134_vm1, %v2299_v35 }
  0xeb   :  { %v172_v39 = vpop.f32.mrb[0].mxu0 }
  0xec   :  { %v245_v42 = vpop.f32.mrb[0].mxu1  ;;  %v2423_v43 = vpop.f32.mrb[1].mxu0 }
  0xed   :  { %v246_v45 = vadd.f32 %v245_v42, %v172_v39  ;;  %v2435_v46 = vpop.f32.mrb[1].mxu1  ;;  %v175_v47 = vpop.f32.mrb[2].mxu0 }
  0xee   :  { %v248_v48 = vpop.f32.mrb[2].mxu1  ;;  %v2424_v49 = vpop.f32.mrb[3].mxu0 }
  0xef   :  { %v249_v21 = vadd.f32 %v248_v48, %v175_v47  ;;  %v2436_v50 = vpop.f32.mrb[3].mxu1 }
  0xfb   :  { %v356_v53 = vpop.f32.mrb[4].mxu0 }
  0xfc   :  { %v363_v54 = vadd.f32 %v356_v53, %v246_v45  ;;  %v2447_v14 = vpop.f32.mrb[5].mxu0  ;;  %v466_v18 = vpop.f32.mrb[4].mxu1 }
  0xfd   :  { %v359_v55 = vpop.f32.mrb[6].mxu0  ;;  %v2459_v57 = vpop.f32.mrb[5].mxu1 }
  0xfe   :  { %v364_v8 = vadd.f32 %v359_v55, %v249_v21  ;;  %v473_v58 = vadd.f32 %v466_v18, %v363_v54  ;;  %v2448_v59 = vpop.f32.mrb[7].mxu0  ;;  %v469_v60 = vpop.f32.mrb[6].mxu1 }
  0xff   :  { %v2460_v61 = vpop.f32.mrb[7].mxu1 }
 0x100   :  { %v474_v25 = vadd.f32 %v469_v60, %v364_v8 }
 0x10b   :  { %v561_v62 = vpop.f32.mrb[8].mxu0 }
 0x10c   :  { %v568_v11 = vadd.f32 %v561_v62, %v473_v58  ;;  %v2471_v26 = vpop.f32.mrb[9].mxu0  ;;  %v653_v2 = vpop.f32.mrb[8].mxu1  ;;  %v2305_v62 = vld [vmem:[%s3602_s2] ss:$0 sm:$0xff] }
 0x10d   :  { %v564_v3 = vpop.f32.mrb[10].mxu0  ;;  %v2483_v4 = vpop.f32.mrb[9].mxu1 }
 0x10e   :  { %v569_v32 = vadd.f32 %v564_v3, %v474_v25  ;;  %v660_v5 = vadd.f32 %v653_v2, %v568_v11  ;;  %v2472_v6 = vpop.f32.mrb[11].mxu0  ;;  %v656_v13 = vpop.f32.mrb[10].mxu1 }
 0x10f   :  { %v2484_v15 = vpop.f32.mrb[11].mxu1 }
 0x110   :  { %v661_v7 = vadd.f32 %v656_v13, %v569_v32 }
 0x11b   :  { %v758_v16 = vpop.f32.mrb[12].mxu0 }
 0x11c   :  { %v765_v23 = vadd.f32 %v758_v16, %v660_v5  ;;  %v2495_v12 = vpop.f32.mrb[13].mxu0  ;;  %v860_v9 = vpop.f32.mrb[12].mxu1 }
 0x11d   :  { %v761_v44 = vpop.f32.mrb[14].mxu0  ;;  %v2507_v52 = vpop.f32.mrb[13].mxu1 }
 0x11e   :  { %v766_v1 = vadd.f32 %v761_v44, %v661_v7  ;;  %v867_v10 = vadd.f32 %v860_v9, %v765_v23  ;;  %v2496_v17 = vpop.f32.mrb[15].mxu0  ;;  %v863_v35 = vpop.f32.mrb[14].mxu1 }
 0x11f   :  { %v2508_v33 = vpop.f32.mrb[15].mxu1 }
 0x120   :  { %v868_v56 = vadd.f32 %v863_v35, %v766_v1 }
 0x12b   :  { %v953_v20 = vpop.f32.mrb[16].mxu0 }
 0x12c   :  { %v960_v37 = vadd.f32 %v953_v20, %v867_v10  ;;  %v2519_v22 = vpop.f32.mrb[17].mxu0  ;;  %v1043_v24 = vpop.f32.mrb[16].mxu1 }
 0x12d   :  { %v956_v41 = vpop.f32.mrb[18].mxu0  ;;  %v2531_v63 = vpop.f32.mrb[17].mxu1 }
 0x12e   :  { %v961_v27 = vadd.f32 %v956_v41, %v868_v56  ;;  %v1050_v40 = vadd.f32 %v1043_v24, %v960_v37  ;;  %v2520_v51 = vpop.f32.mrb[19].mxu0  ;;  %v1046_v28 = vpop.f32.mrb[18].mxu1 }
 0x12f   :  { %v2532_v29 = vpop.f32.mrb[19].mxu1  ;;  %v2306_v51 = vld [vmem:[%s3603_s30] ss:$0 sm:$0xff] }
 0x130   :  { %v1051_v30 = vadd.f32 %v1046_v28, %v961_v27 }
 0x13b   :  { %v1144_v31 = vpop.f32.mrb[20].mxu0 }
 0x13c   :  { %v1151_v34 = vadd.f32 %v1144_v31, %v1050_v40  ;;  %v2543_v38 = vpop.f32.mrb[21].mxu0  ;;  %v1242_v39 = vpop.f32.mrb[20].mxu1  ;;  %v2307_v31 = vld [vmem:[%s3604_s25] ss:$0 sm:$0xff] }
 0x13d   :  { %v1147_v42 = vpop.f32.mrb[22].mxu0  ;;  %v2555_v43 = vpop.f32.mrb[21].mxu1 }
 0x13e   :  { %v1152_v45 = vadd.f32 %v1147_v42, %v1051_v30  ;;  %v1249_v46 = vadd.f32 %v1242_v39, %v1151_v34  ;;  %v2544_v47 = vpop.f32.mrb[23].mxu0  ;;  %v1245_v48 = vpop.f32.mrb[22].mxu1  ;;  %v1598_v30 = vlaneseq }
 0x13f   :  { %v2556_v49 = vpop.f32.mrb[23].mxu1 }
 0x140   :  { %v1250_v21 = vadd.f32 %v1245_v48, %v1152_v45  ;;  %v3442_v43 = vshrl.u32 %v1598_v30, 7  ;;  %v1595_v49 = vld [vmem:[%s3605_s1] sm:$0x7] }
 0x142   :  { %v1600_v47 = vsub.s32 0, %v3442_v43  ;;  %v1608_v48 = vsub.s32 1, %v3442_v43 }
 0x14b   :  { %v1335_v50 = vpop.f32.mrb[24].mxu0 }
 0x14c   :  { %v1342_v53 = vadd.f32 %v1335_v50, %v1249_v46  ;;  %v2567_v54 = vpop.f32.mrb[25].mxu0  ;;  %v1425_v14 = vpop.f32.mrb[24].mxu1  ;;  %v1601_v50 = vrot.slane %v1595_v49, %v1600_v47 }
 0x14d   :  { %v1338_v18 = vpop.f32.mrb[26].mxu0  ;;  %v2579_v55 = vpop.f32.mrb[25].mxu1 }
 0x14e   :  { %v1343_v57 = vadd.f32 %v1338_v18, %v1250_v21  ;;  %v1432_v8 = vadd.f32 %v1425_v14, %v1342_v53  ;;  %v2568_v58 = vpop.f32.mrb[27].mxu0  ;;  %v1428_v59 = vpop.f32.mrb[26].mxu1  ;;  %v1618_v21 = vsub.s32 2, %v3442_v43  ;;  %v1609_v53 = vrot.slane %v1595_v49, %v1608_v48 }
 0x14f   :  { %v2580_v60 = vpop.f32.mrb[27].mxu1 }
 0x150   :  { %v1433_v61 = vadd.f32 %v1428_v59, %v1343_v57  ;;  %v1619_v54 = vrot.slane %v1595_v49, %v1618_v21 }
 0x15b   :  { %v1520_v25 = vpop.f32.mrb[28].mxu0 }
 0x15c   :  { %v1527_v11 = vadd.f32 %v1520_v25, %v1432_v8  ;;  %v2591_v26 = vpop.f32.mrb[29].mxu0 }
 0x15d   :  { %v1523_v2 = vpop.f32.mrb[30].mxu0 }
 0x15e   :  { %v1536_v3 = vadd.f32 %v2305_v62, %v1527_v11  ;;  %v1528_v4 = vadd.f32 %v1523_v2, %v1433_v61  ;;  %v2592_v32 = vpop.f32.mrb[31].mxu0 }
 0x160   :  { %v1537_v5 = vadd.f32 %v2305_v62, %v1528_v4  ;;  %v1541_v6 = vsel %vm1540_vm10, %v1536_v3, 0.0 }
 0x162   :  { %v1542_v13 = vsel %vm1540_vm10, %v1537_v5, 0.0 }
 0x163   :  { %v1543_v15 = vadd.f32 %v1542_v13, %v1541_v6 }
 0x165   :  { %v1544_v7 = vrot.slane %v1543_v15, 4 }
 0x167   :  { %v1545_v16 = vadd.f32 %v1544_v7, %v1543_v15 }
 0x169   :  { %v1546_v23 = vrot.slane %v1545_v16, 2 }
 0x16b   :  { %v1547_v12 = vadd.f32 %v1546_v23, %v1545_v16 }
 0x16d   :  { %v1548_v9 = vrot.slane %v1547_v12, 1 }
 0x16f   :  { %v1549_v44 = vadd.f32 %v1548_v9, %v1547_v12 }
 0x171   :  { %v1551_v52 = vmul.f32 0.0625, %v1549_v44 }
 0x173   :  { %v1552_v1 = vsub.f32 %v1536_v3, %v1551_v52  ;;  %v1553_v10 = vsub.f32 %v1537_v5, %v1551_v52  ;;  %v2308_v3 = vld [vmem:[%s3606_s26] ss:$0 sm:$0xff] }
 0x175   :  { %v1554_v17 = vmul.f32 %v1552_v1, %v1552_v1  ;;  %v1555_v35 = vmul.f32 %v1553_v10, %v1553_v10 }
 0x177   :  { %v1556_v33 = vsel %vm1540_vm10, %v1554_v17, 0.0  ;;  %v1557_v36 = vsel %vm1540_vm10, %v1555_v35, 0.0 }
 0x178   :  { %v1558_v56 = vadd.f32 %v1557_v36, %v1556_v33 }
 0x17a   :  { %v1559_v19 = vrot.slane %v1558_v56, 4 }
 0x17c   :  { %v1560_v20 = vadd.f32 %v1559_v19, %v1558_v56 }
 0x17e   :  { %v1561_v37 = vrot.slane %v1560_v20, 2 }
 0x180   :  { %v1562_v22 = vadd.f32 %v1561_v37, %v1560_v20 }
 0x182   :  { %v1563_v24 = vrot.slane %v1562_v22, 1 }
 0x184   :  { %v1564_v41 = vadd.f32 %v1563_v24, %v1562_v22 }
 0x186   :  { %v1565_v63 = vmul.f32 0.0625, %v1564_v41 }
 0x188   :  { %v1566_v27 = vadd.f32 1e-05, %v1565_v63 }
 0x18a   :  { %2683 = vrsqrt.f32 %v1566_v27 }
 0x194   :  { %v2684_v40 = vpop.eup %2683 }
 0x195   :  { %v1568_v28 = vmul.f32 %v2684_v40, %v1552_v1  ;;  %v1569_v29 = vmul.f32 %v2684_v40, %v1553_v10 }
 0x197   :  { %v1576_v34 = vmul.f32 %v2306_v51, %v1568_v28  ;;  %v1577_v38 = vmul.f32 %v2306_v51, %v1569_v29  ;;  %v2309_v28 = vld [vmem:[%s3555_s8] ss:$0 sm:$0xff] }
 0x199   :  { %v1584_v39 = vadd.f32 %v2307_v31, %v1576_v34  ;;  %v1585_v42 = vadd.f32 %v2307_v31, %v1577_v38  ;;  %v2310_v31 = vld [vmem:[%s3556_s9] ss:$0 sm:$0xff] }
 0x19b   :  { %v1586_v45 = vmax.f32 %v1584_v39, 0.0  ;;  %v1587_v46 = vmax.f32 %v1585_v42, 0.0 }
 0x19d   :  { %1593 = vst.msk [vmem:[#allocation2 + $0x1] sm:$0xff] %vm1540_vm10, %v1586_v45  ;;  %1594 = vst.msk [vmem:[#allocation2 + $0x11] sm:$0xff] %vm1540_vm10, %v1587_v46 }
 0x1a4   :  { %v1596_v14 = vld [vmem:[#allocation2] sm:$0xff]  ;;  %v1597_v18 = vld [vmem:[#allocation2 + $0x10] sm:$0xff] }
 0x1a5   :  { %v1604_v55 = vld [vmem:[#allocation2 + $0x1] sm:$0xff]  ;;  %v1602_v57 = vmul.f32 %v1601_v50, %v1596_v14  ;;  %v1603_v8 = vmul.f32 %v1601_v50, %v1597_v18  ;;  %v1605_v58 = vld [vmem:[#allocation2 + $0x11] sm:$0xff]  ;;  %v2311_v18 = vld [vmem:[%s3558_s11] ss:$0 sm:$0xff] }
 0x1a6   :  { %v1610_v59 = vmul.f32 %v1609_v53, %v1604_v55  ;;  %v1614_v60 = vld [vmem:[#allocation2 + $0x2] sm:$0xff]  ;;  %v1615_v61 = vld [vmem:[#allocation2 + $0x12] sm:$0xff]  ;;  %v1611_v25 = vmul.f32 %v1609_v53, %v1605_v58 }
 0x1a7   :  { %v1620_v11 = vmul.f32 %v1619_v54, %v1614_v60  ;;  %v1621_v2 = vmul.f32 %v1619_v54, %v1615_v61  ;;  %v2679_v50 = vld [vmem:[%s3557_s18] sm:$0xff]   ;;  %v2680_v53 = vld [vmem:[%s3557_s18 + $0x8] sm:$0xff]   ;;  %v2681_v54 = vld [vmem:[%s3557_s18 + $0x10] sm:$0xff]  }
 0x1a8   :  { %v1612_v62 = vadd.f32 %v1610_v59, %v1602_v57  ;;  %v1613_v26 = vadd.f32 %v1611_v25, %v1603_v8  ;;  %v2682_v14 = vld [vmem:[%s3557_s18 + $0x18] sm:$0xff]  }
 0x1aa   :  { %v1622_v4 = vadd.f32 %v1620_v11, %v1612_v62  ;;  %v1623_v32 = vadd.f32 %v1621_v2, %v1613_v26 }
 0x1ac   :  { %v1631_v5 = vadd.f32 %v2308_v3, %v1622_v4  ;;  %v1632_v6 = vadd.f32 %v2308_v3, %v1623_v32 }
 0x1ae   :  { %v1635_v13 = vsel %vm1540_vm10, %v1631_v5, 0.0  ;;  %v1636_v15 = vsel %vm1540_vm10, %v1632_v6, 0.0 }
 0x1af   :  { %v1637_v7 = vadd.f32 %v1636_v15, %v1635_v13 }
 0x1b1   :  { %v1638_v16 = vrot.slane %v1637_v7, 4 }
 0x1b3   :  { %v1639_v23 = vadd.f32 %v1638_v16, %v1637_v7 }
 0x1b5   :  { %v1640_v12 = vrot.slane %v1639_v23, 2 }
 0x1b7   :  { %v1641_v9 = vadd.f32 %v1640_v12, %v1639_v23 }
 0x1b9   :  { %v1642_v44 = vrot.slane %v1641_v9, 1 }
 0x1bb   :  { %v1643_v52 = vadd.f32 %v1642_v44, %v1641_v9 }
 0x1bd   :  { %v1644_v1 = vmul.f32 0.0625, %v1643_v52 }
 0x1bf   :  { %v1645_v10 = vsub.f32 %v1631_v5, %v1644_v1  ;;  %v1646_v17 = vsub.f32 %v1632_v6, %v1644_v1 }
 0x1c1   :  { %v1647_v35 = vmul.f32 %v1645_v10, %v1645_v10  ;;  %v1648_v33 = vmul.f32 %v1646_v17, %v1646_v17 }
 0x1c3   :  { %v1649_v36 = vsel %vm1540_vm10, %v1647_v35, 0.0  ;;  %v1650_v56 = vsel %vm1540_vm10, %v1648_v33, 0.0 }
 0x1c4   :  { %v1651_v19 = vadd.f32 %v1650_v56, %v1649_v36  ;;  %v2315_v36 = vld [vmem:[%s3559_s12] ss:$0 sm:$0xff] }
 0x1c6   :  { %v1652_v20 = vrot.slane %v1651_v19, 4 }
 0x1c8   :  { %v1653_v37 = vadd.f32 %v1652_v20, %v1651_v19  ;;  %v2316_v20 = vld [vmem:[%s3560_s13] ss:$0 sm:$0xff] }
 0x1ca   :  { %v1654_v22 = vrot.slane %v1653_v37, 2 }
 0x1cc   :  { %v1655_v24 = vadd.f32 %v1654_v22, %v1653_v37 }
 0x1ce   :  { %v1656_v41 = vrot.slane %v1655_v24, 1 }
 0x1d0   :  { %v1657_v63 = vadd.f32 %v1656_v41, %v1655_v24 }
 0x1d2   :  { %v1658_v27 = vmul.f32 0.0625, %v1657_v63 }
 0x1d4   :  { %v1659_v40 = vadd.f32 1e-05, %v1658_v27 }
 0x1d6   :  { %2685 = vrsqrt.f32 %v1659_v40  ;;  %v1804_v40 = vld [vmem:[%s3561_s14] sm:$0x7] }
 0x1e0   :  { %v2686_v51 = vpop.eup %2685 }
 0x1e1   :  { %v1661_v29 = vmul.f32 %v2686_v51, %v1645_v10  ;;  %v1662_v30 = vmul.f32 %v2686_v51, %v1646_v17  ;;  %v1811_v51 = vrot.slane %v1804_v40, %v1600_v47 }
 0x1e3   :  { %v1669_v34 = vmul.f32 %v2309_v28, %v1661_v29  ;;  %v1670_v38 = vmul.f32 %v2309_v28, %v1662_v30  ;;  %v1821_v28 = vrot.slane %v1804_v40, %v1608_v48  ;;  %v2317_v29 = vld [vmem:[%s3562_s15] ss:$0 sm:$0xff] }
 0x1e5   :  { %v1677_v39 = vadd.f32 %v2310_v31, %v1669_v34  ;;  %v1678_v42 = vadd.f32 %v2310_v31, %v1670_v38  ;;  %v1833_v34 = vrot.slane %v1804_v40, %v1618_v21  ;;  %v29_v40 = vstv %s3565_s23 }
 0x1e6   :  { %30 = vst [vmem:[#allocation4] sm:$0x1] %v29_v40 }
 0x1e7   :  { %v1679_v45 = vmax.f32 %v1677_v39, 0.0  ;;  %v1680_v46 = vmax.f32 %v1678_v42, 0.0 }
 0x1e9   :  { %v1681_v49 = vpack.c.bf16 %v1680_v46, %v1679_v45 }
 0x1eb   :  { %2598 = vmatmul.mubr.msk.bf16.vlgmr.msra.gmra.mrb[28].mxu1 %vm1540_vm10, %v1681_v49 }
 0x1ec   :  { %2609 = vmatprep.mubr.msk.bf16.mxu1 %vm2694_vm0, %v2693_v0  ;;  %2602 = vmatpush3.bf16.msra.mxu1 %v2679_v50  ;;  %vm2038_vm0 = vcmask 1043456  }
 0x1ed   :  { %2603 = vmatprep.subr.bf16.mxu1 %v2693_v0 }
 0x1f0   :  { %2604 = vmatpush3.bf16.msra.mxu1 %v2680_v53  ;;  %v1845_v53 = vcombine.high %v2317_v29, %v2317_v29 }
 0x1f1   :  { %2605 = vmatprep.subr.bf16.mxu1 %v2693_v0 }
 0x1f4   :  { %2606 = vmatpush3.bf16.msra.mxu1 %v2681_v54 }
 0x1f5   :  { %2607 = vmatprep.subr.bf16.mxu1 %v2693_v0 }
 0x1f8   :  { %2608 = vmatpush3.bf16.msra.mxu1 %v2682_v14 }
 0x2be   :  { %v1742_v55 = vpop.f32.mrb[28].mxu1 }
 0x2bf   :  { %v1743_v57 = vadd.f32 %v2311_v18, %v1742_v55  ;;  %v2599_v8 = vpop.f32.mrb[29].mxu1 }
 0x2c0   :  { %v1745_v58 = vpop.f32.mrb[30].mxu1 }
 0x2c1   :  { %v1746_v59 = vadd.f32 %v2311_v18, %v1745_v58  ;;  %v2600_v60 = vpop.f32.mrb[31].mxu1  ;;  %v1751_v61 = vsel %vm134_vm1, %v1743_v57, 0.0 }
 0x2c3   :  { %v1752_v25 = vsel %vm134_vm1, %v1746_v59, 0.0 }
 0x2c4   :  { %v1753_v62 = vadd.f32 %v1752_v25, %v1751_v61 }
 0x2c6   :  { %v1754_v11 = vrot.slane %v1753_v62, 4 }
 0x2c8   :  { %v1755_v26 = vadd.f32 %v1754_v11, %v1753_v62 }
 0x2ca   :  { %v1756_v2 = vrot.slane %v1755_v26, 2 }
 0x2cc   :  { %v1757_v0 = vadd.f32 %v1756_v2, %v1755_v26 }
 0x2ce   :  { %v1758_v3 = vrot.slane %v1757_v0, 1 }
 0x2d0   :  { %v1759_v4 = vadd.f32 %v1758_v3, %v1757_v0 }
 0x2d2   :  { %v1760_v32 = vmul.f32 0.0625, %v1759_v4 }
 0x2d4   :  { %v1761_v5 = vsub.f32 %v1743_v57, %v1760_v32  ;;  %v1762_v6 = vsub.f32 %v1746_v59, %v1760_v32 }
 0x2d6   :  { %v1763_v13 = vmul.f32 %v1761_v5, %v1761_v5  ;;  %v1764_v15 = vmul.f32 %v1762_v6, %v1762_v6 }
 0x2d8   :  { %v1765_v7 = vsel %vm134_vm1, %v1763_v13, 0.0  ;;  %v1766_v16 = vsel %vm134_vm1, %v1764_v15, 0.0 }
 0x2d9   :  { %v1767_v23 = vadd.f32 %v1766_v16, %v1765_v7 }
 0x2db   :  { %v1768_v12 = vrot.slane %v1767_v23, 4 }
 0x2dd   :  { %v1769_v9 = vadd.f32 %v1768_v12, %v1767_v23 }
 0x2df   :  { %v1770_v44 = vrot.slane %v1769_v9, 2 }
 0x2e1   :  { %v1771_v52 = vadd.f32 %v1770_v44, %v1769_v9 }
 0x2e3   :  { %v1772_v1 = vrot.slane %v1771_v52, 1 }
 0x2e5   :  { %v1773_v10 = vadd.f32 %v1772_v1, %v1771_v52  ;;  %v2318_v52 = vld [vmem:[%s3563_s16] ss:$0 sm:$0xff] }
 0x2e7   :  { %v1774_v17 = vmul.f32 0.0625, %v1773_v10  ;;  %v2319_v10 = vld [vmem:[%s3564_s17] ss:$0 sm:$0xff] }
 0x2e9   :  { %v1775_v35 = vadd.f32 1e-05, %v1774_v17 }
 0x2eb   :  { %2687 = vrsqrt.f32 %v1775_v35 }
 0x2f5   :  { %v2688_v33 = vpop.eup %2687 }
 0x2f6   :  { %v1777_v56 = vmul.f32 %v2688_v33, %v1761_v5  ;;  %v1778_v19 = vmul.f32 %v2688_v33, %v1762_v6  ;;  %v1896_v33 = vcombine.high %v2318_v52, %v2318_v52 }
 0x2f8   :  { %v1785_v37 = vmul.f32 %v2315_v36, %v1777_v56  ;;  %v1786_v22 = vmul.f32 %v2315_v36, %v1778_v19  ;;  %v1906_v19 = vcombine.high %v2319_v10, %v2319_v10 }
 0x2fa   :  { %v1793_v24 = vadd.f32 %v2316_v20, %v1785_v37  ;;  %v1794_v41 = vadd.f32 %v2316_v20, %v1786_v22 }
 0x2fc   :  { %v1795_v63 = vmax.f32 %v1793_v24, 0.0  ;;  %v1796_v27 = vmax.f32 %v1794_v41, 0.0 }
 0x2fe   :  { %1802 = vst.msk [vmem:[#allocation3 + $0x1] sm:$0xff] %vm134_vm1, %v1795_v63  ;;  %1803 = vst.msk [vmem:[#allocation3 + $0x11] sm:$0xff] %vm134_vm1, %v1796_v27 }
 0x305   :  { %v1805_v30 = vld [vmem:[#allocation3] ss:$2 sm:$0xf]  ;;  %v1807_v31 = vld [vmem:[#allocation3 + $0x10] ss:$2 sm:$0xf] }
 0x306   :  { %v1812_v38 = vmul.f32 %v1811_v51, %v1805_v30  ;;  %v1813_v39 = vmul.f32 %v1811_v51, %v1807_v31  ;;  %v1815_v42 = vld [vmem:[#allocation3 + $0x1] ss:$2 sm:$0xf]  ;;  %v1817_v45 = vld [vmem:[#allocation3 + $0x11] ss:$2 sm:$0xf] }
 0x307   :  { %v1822_v46 = vmul.f32 %v1821_v28, %v1815_v42  ;;  %v1823_v49 = vmul.f32 %v1821_v28, %v1817_v45  ;;  %v1827_v50 = vld [vmem:[#allocation3 + $0x2] ss:$2 sm:$0xf]  ;;  %v1829_v47 = vld [vmem:[#allocation3 + $0x12] ss:$2 sm:$0xf] }
 0x308   :  { %v1834_v14 = vmul.f32 %v1833_v34, %v1827_v50  ;;  %v1835_v18 = vmul.f32 %v1833_v34, %v1829_v47  ;;  %v2320_v51 = vld [vmem:[%s3566_s19] ss:$0 sm:$0xff] }
 0x309   :  { %v1824_v54 = vadd.f32 %v1822_v46, %v1812_v38  ;;  %v1825_v48 = vadd.f32 %v1823_v49, %v1813_v39 }
 0x30b   :  { %v1836_v55 = vadd.f32 %v1834_v14, %v1824_v54  ;;  %v1837_v57 = vadd.f32 %v1835_v18, %v1825_v48 }
 0x30d   :  { %v1847_v8 = vadd.f32 %v2317_v29, %v1836_v55  ;;  %v1848_v58 = vadd.f32 %v1845_v53, %v1837_v57 }
 0x30f   :  { %v1853_v59 = vcombine.low %v1847_v8, %v1848_v58 }
 0x311   :  { %v1855_v43 = vsel %vm134_vm1, %v1853_v59, 0.0 }
 0x312   :  { %v1856_v21 = vrot.slane %v1855_v43, 4 }
 0x314   :  { %v1857_v60 = vadd.f32 %v1856_v21, %v1855_v43  ;;  %v2326_v43 = vld [vmem:[%s3567_s20] ss:$0 sm:$0xff] }
 0x316   :  { %v1858_v61 = vrot.slane %v1857_v60, 2 }
 0x318   :  { %v1859_v25 = vadd.f32 %v1858_v61, %v1857_v60  ;;  %v2327_v60 = vld [vmem:[%s3568_s21] ss:$0 sm:$0xff] }
 0x31a   :  { %v1860_v62 = vrot.slane %v1859_v25, 1 }
 0x31c   :  { %v1861_v11 = vadd.f32 %v1860_v62, %v1859_v25 }
 0x31e   :  { %v1863_v26 = vmul.f32 0.125, %v1861_v11 }
 0x320   :  { %v1865_v2 = vcombine.high %v1863_v26, %v1863_v26  ;;  %v1867_v0 = vsub.f32 %v1847_v8, %v1863_v26 }
 0x322   :  { %v1868_v3 = vsub.f32 %v1848_v58, %v1865_v2  ;;  %v1869_v4 = vmul.f32 %v1867_v0, %v1867_v0 }
 0x324   :  { %v1870_v32 = vmul.f32 %v1868_v3, %v1868_v3 }
 0x326   :  { %v1873_v5 = vcombine.low %v1869_v4, %v1870_v32 }
 0x328   :  { %v1875_v6 = vsel %vm134_vm1, %v1873_v5, 0.0 }
 0x329   :  { %v1876_v13 = vrot.slane %v1875_v6, 4 }
 0x32b   :  { %v1877_v15 = vadd.f32 %v1876_v13, %v1875_v6 }
 0x32d   :  { %v1878_v7 = vrot.slane %v1877_v15, 2 }
 0x32f   :  { %v1879_v16 = vadd.f32 %v1878_v7, %v1877_v15 }
 0x331   :  { %v1880_v23 = vrot.slane %v1879_v16, 1 }
 0x333   :  { %v1881_v12 = vadd.f32 %v1880_v23, %v1879_v16 }
 0x335   :  { %v1882_v9 = vmul.f32 0.125, %v1881_v12 }
 0x337   :  { %v1883_v44 = vadd.f32 1e-05, %v1882_v9 }
 0x339   :  { %2689 = vrsqrt.f32 %v1883_v44 }
 0x343   :  { %v2690_v1 = vpop.eup %2689 }
 0x344   :  { %v1886_v17 = vcombine.high %v2690_v1, %v2690_v1  ;;  %v1888_v35 = vmul.f32 %v2690_v1, %v1867_v0 }
 0x346   :  { %v1889_v36 = vmul.f32 %v1886_v17, %v1868_v3  ;;  %v1898_v56 = vmul.f32 %v2318_v52, %v1888_v35  ;;  %v2328_v52 = vld [vmem:[%s3569_s22] ss:$0 sm:$0xff] }
 0x348   :  { %v1899_v20 = vmul.f32 %v1896_v33, %v1889_v36  ;;  %v1908_v37 = vadd.f32 %v2319_v10, %v1898_v56  ;;  %v2329_v36 = vld [vmem:[#allocation4] ss:$0 sm:$0xff] }
 0x34a   :  { %v1909_v22 = vadd.f32 %v1906_v19, %v1899_v20  ;;  %v1910_v24 = vmax.f32 %v1908_v37, 0.0 }
 0x34c   :  { %v1911_v41 = vmax.f32 %v1909_v22, 0.0 }
 0x34e   :  { %v1914_v63 = vcombine.low %v1910_v24, %v1911_v41 }
 0x350   :  { %v1916_v27 = vpack.c.bf16 %v1914_v63, %v1914_v63 }
 0x352   :  { %2610 = vmatmul.mubr.msk.bf16.vlgmr.msra.gmra.mrb[32].mxu1 %vm134_vm1, %v1916_v27  ;;  %vm2068_vm1 = vcmask 1041409  }
 0x425   :  { %v1993_v28 = vpop.f32.mrb[32].mxu1 }
 0x426   :  { %v1994_v29 = vadd.f32 %v2320_v51, %v1993_v28  ;;  %v2611_v30 = vpop.f32.mrb[33].mxu1 }
 0x427   :  { %v1996_v31 = vpop.f32.mrb[34].mxu1 }
 0x428   :  { %v2001_v34 = vrot.slane %v1994_v29, 4  ;;  %v2612_v38 = vpop.f32.mrb[35].mxu1 }
 0x42a   :  { %v2002_v39 = vadd.f32 %v2001_v34, %v1994_v29 }
 0x42c   :  { %v2003_v42 = vrot.slane %v2002_v39, 2 }
 0x42e   :  { %v2004_v45 = vadd.f32 %v2003_v42, %v2002_v39 }
 0x430   :  { %v2005_v46 = vrot.slane %v2004_v45, 1 }
 0x432   :  { %v2006_v49 = vadd.f32 %v2005_v46, %v2004_v45 }
 0x434   :  { %v2007_v50 = vmul.f32 0.125, %v2006_v49 }
 0x436   :  { %v2008_v47 = vsub.f32 %v1994_v29, %v2007_v50 }
 0x438   :  { %v2009_v53 = vmul.f32 %v2008_v47, %v2008_v47 }
 0x43a   :  { %v2010_v54 = vrot.slane %v2009_v53, 4 }
 0x43c   :  { %v2011_v48 = vadd.f32 %v2010_v54, %v2009_v53 }
 0x43e   :  { %v2012_v14 = vrot.slane %v2011_v48, 2 }
 0x440   :  { %v2013_v18 = vadd.f32 %v2012_v14, %v2011_v48 }
 0x442   :  { %v2014_v55 = vrot.slane %v2013_v18, 1 }
 0x444   :  { %v2015_v57 = vadd.f32 %v2014_v55, %v2013_v18 }
 0x446   :  { %v2016_v8 = vmul.f32 0.125, %v2015_v57 }
 0x448   :  { %v2017_v58 = vadd.f32 1e-05, %v2016_v8 }
 0x44a   :  { %2691 = vrsqrt.f32 %v2017_v58 }
 0x454   :  { %v2692_v59 = vpop.eup %2691 }
 0x455   :  { %v2019_v21 = vmul.f32 %v2692_v59, %v2008_v47 }
 0x457   :  { %v2026_v61 = vmul.f32 %v2326_v43, %v2019_v21 }
 0x459   :  { %v2033_v25 = vadd.f32 %v2327_v60, %v2026_v61 }
 0x45b   :  { %v2034_v62 = vmax.f32 %v2033_v25, 0.0 }
 0x45d   :  { %v2036_v11 = vcombine.high %v2034_v62, %v2034_v62  ;;  %v2039_v26 = vsel %vm2038_vm0, %v2034_v62, 0.0 }
 0x45e   :  { %v2040_v2 = vrot.slane %v2039_v26, 4 }
 0x45f   :  { %v2046_v0 = vsel %vm2038_vm0, %v2036_v11, 0.0 }
 0x460   :  { %v2041_v3 = vadd.f32 %v2040_v2, %v2039_v26  ;;  %v2047_v4 = vrot.slane %v2046_v0, 4 }
 0x462   :  { %v2042_v32 = vrot.slane %v2041_v3, 2  ;;  %v2048_v5 = vadd.f32 %v2047_v4, %v2046_v0 }
 0x464   :  { %v2043_v6 = vadd.f32 %v2042_v32, %v2041_v3  ;;  %v2049_v13 = vrot.slane %v2048_v5, 2 }
 0x466   :  { %v2044_v15 = vrot.slane %v2043_v6, 1  ;;  %v2050_v7 = vadd.f32 %v2049_v13, %v2048_v5 }
 0x468   :  { %v2045_v16 = vadd.f32 %v2044_v15, %v2043_v6  ;;  %v2051_v23 = vrot.slane %v2050_v7, 1 }
 0x46a   :  { %v2052_v12 = vadd.f32 %v2051_v23, %v2050_v7  ;;  %v2054_v9 = vmul.f32 0.25, %v2045_v16 }
 0x46c   :  { %v2055_v44 = vmul.f32 0.25, %v2052_v12  ;;  %v2063_v10 = vmul.f32 %v2328_v52, %v2054_v9 }
 0x46e   :  { %v2064_v1 = vmul.f32 %v2328_v52, %v2055_v44 }
 0x470   :  { %v2067_v17 = vrot.slane %v2064_v1, 7 }
 0x472   :  { %v2069_v35 = vsel %vm2068_vm1, %v2067_v17, %v2063_v10 }
 0x473   :  { %v2072_v33 = vsel %vm869_vm2, %v2069_v35, 0.0 }
 0x474   :  { %2073 = vadd.xlane.f32.xlu0 %v2072_v33 }
 0x501   :  { %v2074_v56 = vpop.xlane.xlu0 %2073 }
 0x502   :  { %v2082_v19 = vadd.f32 %v2329_v36, %v2074_v56 }
 0x504   :  { %2084 = vst.msk [vmem:[%s3570_s24] sm:$0x3] %vm2083_vm12, %v2082_v19 }

</bundles_post_ra>
